<compile_context>
chip_gen: v7x
topology: tpu7x:2x2x1
jax: 0.10.0
libtpu: 0.0.40
codegen_flags: <defaults>
</compile_context>

<pallas_src>
import jax
import jax.numpy as jnp
import numpy as np
from jax.experimental import pallas as pl
from jax.experimental.pallas import tpu as pltpu


def _rana_mlp_kernel(x_ref,        # (tS, D)     bf16
                     bcat_ref,     # (D, 2R)     bf16   [B_t_up | B_t_gate]
                     ansc_ref,     # (1, 2R)     f32    [A_norm_up/t_up | A_norm_gate/t_gate]
                     atu_ref,      # (R, tF)     bf16
                     atg_ref,      # (R, tF)     bf16
                     wnsc_ref,     # (1, tF)     f32    W_norm / t_down
                     wt_ref,       # (tF, Dm)    bf16
                     o_ref,        # (tS, Dm)    f32
                     acc_ref,      # (tS, Dm)    f32 scratch
                     bxu_ref,      # (tS, R)     bf16 scratch (masked bx_up)
                     bxg_ref):     # (tS, R)     bf16 scratch (masked bx_gate)
    kf = pl.program_id(1)
    r = bxu_ref.shape[1]

    # ---- once per S-tile: fused D->2R projection + neuron-pruning masks ------------
    @pl.when(kf == 0)
    def _():
        bx_cat = jnp.dot(x_ref[...], bcat_ref[...],
                         preferred_element_type=jnp.float32)          # (tS, 2R) f32
        keep = (jnp.abs(bx_cat) * ansc_ref[...]) <= 1.0                # abs_mul_leq (folded t)
        bx_kept = jnp.where(keep, bx_cat, 0.0).astype(bxu_ref.dtype)   # bf16 into MXU later
        bxu_ref[...] = bx_kept[:, :r]
        bxg_ref[...] = bx_kept[:, r:]
        acc_ref[...] = jnp.zeros_like(acc_ref)

    # ---- per F-tile: low-rank up/gate, SwiGLU, thresholded down-proj partial sum ----
    o_up = jnp.dot(bxu_ref[...], atu_ref[...], preferred_element_type=jnp.float32)
    o_gate = jnp.dot(bxg_ref[...], atg_ref[...], preferred_element_type=jnp.float32)
    o_ug = (o_gate * jax.nn.sigmoid(o_gate)) * o_up                    # silu(gate) * up, f32
    m_down = (jnp.abs(o_ug) * wnsc_ref[...]) <= 1.0                    # abs_mul_leq (folded t)
    o_masked = jnp.where(m_down, o_ug, 0.0).astype(wt_ref.dtype)       # bf16 into MXU
    acc_ref[...] += jnp.dot(o_masked, wt_ref[...], preferred_element_type=jnp.float32)

    # ---- last F-tile: emit the finished (tS, Dm) block ------------------------------
    @pl.when(kf == pl.num_programs(1) - 1)
    def _():
        o_ref[...] = acc_ref[...].astype(o_ref.dtype)


def rana_mlp_forward(x, params, *, block_s=128, block_f=256):
    """x: (1, S, D) float32 -> (1, S, D) float32 (matches the PyTorch forward)."""
    (B_t_up, A_norm_up, A_t_up, thresh_up,
     B_t_gate, A_norm_gate, A_t_gate, thresh_gate,
     W_norm, W_t, thresh_down) = params
    assert x.ndim == 3 and x.shape[0] == 1, "module assumes leading batch dim of 1"

    S, D = x.shape[1], x.shape[2]
    R = B_t_up.shape[1]
    F = A_t_up.shape[1]
    Dm = W_t.shape[1]
    # Lane-dense shapes (multiples of 128) — pad weights outside if a model violates this.
    assert D % 128 == 0 and R % 128 == 0 and Dm % 128 == 0 and F % 128 == 0

    # Largest F-tile <= block_f that divides F (F is a multiple of 128, so this terminates).
    tf = min(block_f, F)
    while F % tf:
        tf -= 128

    bf16 = jnp.bfloat16
    x2d = x[0].astype(bf16)
    s_pad = -(-S // block_s) * block_s
    if s_pad != S:
        x2d = jnp.pad(x2d, ((0, s_pad - S), (0, 0)))   # zero rows -> zero outputs, sliced off

    # Fuse the two down-projection factors; fold thresholds into the norms (runtime values).
    b_cat = jnp.concatenate([B_t_up, B_t_gate], axis=1).astype(bf16)                 # (D, 2R)
    an_scaled = jnp.concatenate([A_norm_up / thresh_up,
                                 A_norm_gate / thresh_gate], axis=1).astype(jnp.float32)
    wn_scaled = (W_norm / thresh_down).astype(jnp.float32)                            # (1, F)

    grid = (s_pad // block_s, F // tf)

    out = pl.pallas_call(
        _rana_mlp_kernel,
        out_shape=jax.ShapeDtypeStruct((s_pad, Dm), jnp.float32),
        grid=grid,
        in_specs=[
            pl.BlockSpec((block_s, D), lambda i, k: (i, 0)),    # x          (per S-tile)
            pl.BlockSpec((D, 2 * R), lambda i, k: (0, 0)),      # [B_up|B_gate] (resident)
            pl.BlockSpec((1, 2 * R), lambda i, k: (0, 0)),      # scaled A norms (resident)
            pl.BlockSpec((R, tf), lambda i, k: (0, k)),         # A_t_up     (per F-tile)
            pl.BlockSpec((R, tf), lambda i, k: (0, k)),         # A_t_gate   (per F-tile)
            pl.BlockSpec((1, tf), lambda i, k: (0, k)),         # scaled W_norm (per F-tile)
            pl.BlockSpec((tf, Dm), lambda i, k: (k, 0)),        # W_t        (per F-tile)
        ],
        out_specs=pl.BlockSpec((block_s, Dm), lambda i, k: (i, 0)),
        scratch_shapes=[
            pltpu.VMEM((block_s, Dm), jnp.float32),   # down-proj accumulator
            pltpu.VMEM((block_s, R), bf16),           # masked bx_up   (cached per S-tile)
            pltpu.VMEM((block_s, R), bf16),           # masked bx_gate (cached per S-tile)
        ],
        compiler_params=pltpu.CompilerParams(
            dimension_semantics=("parallel", "arbitrary")),
    )(x2d, b_cat, an_scaled,
      A_t_up.astype(bf16), A_t_gate.astype(bf16),
      wn_scaled, W_t.astype(bf16))

    return out[:S][None]   # drop S padding, .unsqueeze(0)


def rana_mlp_reference(x, params):
    """Pure-JAX reference with identical math and matching bf16 matmul precision."""
    (B_t_up, A_norm_up, A_t_up, thresh_up,
     B_t_gate, A_norm_gate, A_t_gate, thresh_gate,
     W_norm, W_t, thresh_down) = params
    bf16, f32 = jnp.bfloat16, jnp.float32
    xs = x[0].astype(bf16)
    bx_up = jnp.dot(xs, B_t_up.astype(bf16), preferred_element_type=f32)
    bx_gate = jnp.dot(xs, B_t_gate.astype(bf16), preferred_element_type=f32)
    m_up = (jnp.abs(bx_up) * A_norm_up) <= thresh_up
    m_gate = (jnp.abs(bx_gate) * A_norm_gate) <= thresh_gate
    o_up = jnp.dot(jnp.where(m_up, bx_up, 0.0).astype(bf16), A_t_up.astype(bf16),
                   preferred_element_type=f32)
    o_gate = jnp.dot(jnp.where(m_gate, bx_gate, 0.0).astype(bf16), A_t_gate.astype(bf16),
                     preferred_element_type=f32)
    o_ug = (o_gate * jax.nn.sigmoid(o_gate)) * o_up
    m_down = (jnp.abs(o_ug) * W_norm) <= thresh_down
    o_down = jnp.dot(jnp.where(m_down, o_ug, 0.0).astype(bf16), W_t.astype(bf16),
                     preferred_element_type=f32)
    return o_down[None]


def make_params(key, d_model, d_ff, rank):
    ks = jax.random.split(key, 5)
    B_t_up = jax.random.normal(ks[0], (d_model, rank), jnp.float32) / np.sqrt(d_model)
    A_t_up = jax.random.normal(ks[1], (rank, d_ff), jnp.float32) / np.sqrt(rank)
    B_t_gate = jax.random.normal(ks[2], (d_model, rank), jnp.float32) / np.sqrt(d_model)
    A_t_gate = jax.random.normal(ks[3], (rank, d_ff), jnp.float32) / np.sqrt(rank)
    W_t = jax.random.normal(ks[4], (d_ff, d_model), jnp.float32) / np.sqrt(d_ff)

    # Row norms of the second factor / down-proj weight (RaNA pruning criterion).
    A_norm_up = jnp.linalg.norm(A_t_up, axis=1).reshape(1, rank)
    A_norm_gate = jnp.linalg.norm(A_t_gate, axis=1).reshape(1, rank)
    W_norm = jnp.linalg.norm(W_t, axis=1).reshape(1, d_ff)

    # Thresholds chosen so every mask keeps a non-trivial, non-total fraction of entries.
    thresh_up, thresh_gate, thresh_down = 1.0, 1.0, 0.005
    return (B_t_up, A_norm_up, A_t_up, thresh_up,
            B_t_gate, A_norm_gate, A_t_gate, thresh_gate,
            W_norm, W_t, thresh_down)


if __name__ == "__main__":
    # Small but lane-dense shapes (multiples of 128) so the demo exercises the real
    # tiled/pipelined code path: 2 S-tiles x 2 F-tiles.
    S, D_MODEL, D_FF, RANK = 256, 128, 512, 128

    key = jax.random.PRNGKey(0)
    kx, kp = jax.random.split(key)
    x = jax.random.normal(kx, (1, S, D_MODEL), jnp.float32)
    params = make_params(kp, D_MODEL, D_FF, RANK)

    out = jax.block_until_ready(rana_mlp_forward(x, params))
    ref = rana_mlp_reference(x, params)

    np.testing.assert_allclose(np.asarray(out), np.asarray(ref), rtol=5e-2, atol=5e-3)
    assert out.shape == (1, S, D_MODEL)

    print("KERNEL_OK")
</pallas_src>

<mosaic_0001>
module attributes {stable_mosaic.version = 11 : i64} {
  func.func @_rana_mlp_kernel(%arg0: i32, %arg1: i32, %arg2: memref<128x128xbf16, #tpu.memory_space<vmem>>, %arg3: memref<128x256xbf16, #tpu.memory_space<vmem>>, %arg4: memref<1x256xf32, #tpu.memory_space<vmem>>, %arg5: memref<128x256xbf16, #tpu.memory_space<vmem>>, %arg6: memref<128x256xbf16, #tpu.memory_space<vmem>>, %arg7: memref<1x256xf32, #tpu.memory_space<vmem>>, %arg8: memref<256x128xbf16, #tpu.memory_space<vmem>>, %arg9: memref<128x128xf32, #tpu.memory_space<vmem>>, %arg10: memref<128x128xf32, #tpu.memory_space<vmem>>, %arg11: memref<128x128xbf16, #tpu.memory_space<vmem>>, %arg12: memref<128x128xbf16, #tpu.memory_space<vmem>>) attributes {dimension_semantics = [#tpu.dimension_semantics<parallel>, #tpu.dimension_semantics<arbitrary>], iteration_bounds = array<i64: 2, 2>, scalar_prefetch = 0 : i64, scratch_operands = 3 : i64, tpu.core_type = #tpu.core_type<tc>, window_params = [{transform_indices = @transform_0, window_bounds = array<i64: 128, 128>}, {pipeline_mode = #tpu.pipeline_mode<synchronous>, transform_indices = @transform_1, window_bounds = array<i64: 128, 256>}, {pipeline_mode = #tpu.pipeline_mode<synchronous>, transform_indices = @transform_2, window_bounds = array<i64: 1, 256>}, {transform_indices = @transform_3, window_bounds = array<i64: 128, 256>}, {transform_indices = @transform_4, window_bounds = array<i64: 128, 256>}, {transform_indices = @transform_5, window_bounds = array<i64: 1, 256>}, {transform_indices = @transform_6, window_bounds = array<i64: 256, 128>}, {transform_indices = @transform_7, window_bounds = array<i64: 128, 128>}]} {
    %c0_i32 = arith.constant 0 : i32
    %0 = arith.cmpi eq, %arg1, %c0_i32 : i32
    %1 = arith.extui %0 : i1 to i32
    %c0_i32_0 = arith.constant 0 : i32
    %2 = arith.cmpi ne, %1, %c0_i32_0 : i32
    scf.if %2 {
      %c0_22 = arith.constant 0 : index
      %c0_23 = arith.constant 0 : index
      %33 = vector.load %arg2[%c0_22, %c0_23] : memref<128x128xbf16, #tpu.memory_space<vmem>>, vector<128x128xbf16>
      %c0_24 = arith.constant 0 : index
      %c0_25 = arith.constant 0 : index
      %34 = vector.load %arg3[%c0_24, %c0_25] : memref<128x256xbf16, #tpu.memory_space<vmem>>, vector<128x256xbf16>
      %cst_26 = arith.constant dense<0.000000e+00> : vector<128x256xf32>
      %35 = tpu.matmul %33, %34, %cst_26 {dimension_numbers = #tpu.dot_dimension_numbers<[1], [0], [0], [1], [0, 0, 1, 1], [], []>} : vector<128x128xbf16>, vector<128x256xbf16>, vector<128x256xf32> -> vector<128x256xf32>
      %36 = math.absf %35 : vector<128x256xf32>
      %c0_27 = arith.constant 0 : index
      %c0_28 = arith.constant 0 : index
      %37 = vector.load %arg4[%c0_27, %c0_28] : memref<1x256xf32, #tpu.memory_space<vmem>>, vector<1x256xf32>
      %38 = vector.broadcast %37 : vector<1x256xf32> to vector<128x256xf32>
      %39 = arith.mulf %36, %38 : vector<128x256xf32>
      %cst_29 = arith.constant 1.000000e+00 : f32
      %40 = vector.broadcast %cst_29 : f32 to vector<128x256xf32>
      %41 = arith.cmpf ole, %39, %40 : vector<128x256xf32>
      %cst_30 = arith.constant 0.000000e+00 : f32
      %42 = vector.broadcast %cst_30 : f32 to vector<128x256xf32>
      %43 = arith.select %41, %35, %42 : vector<128x256xi1>, vector<128x256xf32>
      %44 = arith.truncf %43 : vector<128x256xf32> to vector<128x256xbf16>
      %45 = vector.extract_strided_slice %44 {offsets = [0, 0], sizes = [128, 128], strides = [1, 1]} : vector<128x256xbf16> to vector<128x128xbf16>
      %c0_31 = arith.constant 0 : index
      %c0_32 = arith.constant 0 : index
      %46 = vector.load %arg11[%c0_31, %c0_32] : memref<128x128xbf16, #tpu.memory_space<vmem>>, vector<128x128xbf16>
      tpu.vector_store %arg11[%c0_31, %c0_32], %45 {strides = array<i32>} : memref<128x128xbf16, #tpu.memory_space<vmem>>, vector<128x128xbf16>,
      %47 = vector.extract_strided_slice %44 {offsets = [0, 128], sizes = [128, 128], strides = [1, 1]} : vector<128x256xbf16> to vector<128x128xbf16>
      %c0_33 = arith.constant 0 : index
      %c0_34 = arith.constant 0 : index
      %48 = vector.load %arg12[%c0_33, %c0_34] : memref<128x128xbf16, #tpu.memory_space<vmem>>, vector<128x128xbf16>
      tpu.vector_store %arg12[%c0_33, %c0_34], %47 {strides = array<i32>} : memref<128x128xbf16, #tpu.memory_space<vmem>>, vector<128x128xbf16>,
      %cst_35 = arith.constant 0.000000e+00 : f32
      %49 = vector.broadcast %cst_35 : f32 to vector<128x128xf32>
      %c0_36 = arith.constant 0 : index
      %c0_37 = arith.constant 0 : index
      %50 = vector.load %arg10[%c0_36, %c0_37] : memref<128x128xf32, #tpu.memory_space<vmem>>, vector<128x128xf32>
      tpu.vector_store %arg10[%c0_36, %c0_37], %49 {strides = array<i32>} : memref<128x128xf32, #tpu.memory_space<vmem>>, vector<128x128xf32>,
    } else {
    }
    %c0 = arith.constant 0 : index
    %c0_1 = arith.constant 0 : index
    %3 = vector.load %arg11[%c0, %c0_1] : memref<128x128xbf16, #tpu.memory_space<vmem>>, vector<128x128xbf16>
    %c0_2 = arith.constant 0 : index
    %c0_3 = arith.constant 0 : index
    %4 = vector.load %arg5[%c0_2, %c0_3] : memref<128x256xbf16, #tpu.memory_space<vmem>>, vector<128x256xbf16>
    %cst = arith.constant dense<0.000000e+00> : vector<128x256xf32>
    %5 = tpu.matmul %3, %4, %cst {dimension_numbers = #tpu.dot_dimension_numbers<[1], [0], [0], [1], [0, 0, 1, 1], [], []>} : vector<128x128xbf16>, vector<128x256xbf16>, vector<128x256xf32> -> vector<128x256xf32>
    %c0_4 = arith.constant 0 : index
    %c0_5 = arith.constant 0 : index
    %6 = vector.load %arg12[%c0_4, %c0_5] : memref<128x128xbf16, #tpu.memory_space<vmem>>, vector<128x128xbf16>
    %c0_6 = arith.constant 0 : index
    %c0_7 = arith.constant 0 : index
    %7 = vector.load %arg6[%c0_6, %c0_7] : memref<128x256xbf16, #tpu.memory_space<vmem>>, vector<128x256xbf16>
    %cst_8 = arith.constant dense<0.000000e+00> : vector<128x256xf32>
    %8 = tpu.matmul %6, %7, %cst_8 {dimension_numbers = #tpu.dot_dimension_numbers<[1], [0], [0], [1], [0, 0, 1, 1], [], []>} : vector<128x128xbf16>, vector<128x256xbf16>, vector<128x256xf32> -> vector<128x256xf32>
    %9 = arith.negf %8 : vector<128x256xf32>
    %10 = math.exp %9 : vector<128x256xf32>
    %cst_9 = arith.constant 1.000000e+00 : f32
    %11 = vector.broadcast %cst_9 : f32 to vector<128x256xf32>
    %12 = arith.addf %11, %10 : vector<128x256xf32>
    %13 = arith.divf %11, %12 : vector<128x256xf32>
    %14 = arith.mulf %8, %13 : vector<128x256xf32>
    %15 = arith.mulf %14, %5 : vector<128x256xf32>
    %16 = math.absf %15 : vector<128x256xf32>
    %c0_10 = arith.constant 0 : index
    %c0_11 = arith.constant 0 : index
    %17 = vector.load %arg7[%c0_10, %c0_11] : memref<1x256xf32, #tpu.memory_space<vmem>>, vector<1x256xf32>
    %18 = vector.broadcast %17 : vector<1x256xf32> to vector<128x256xf32>
    %19 = arith.mulf %16, %18 : vector<128x256xf32>
    %cst_12 = arith.constant 1.000000e+00 : f32
    %20 = vector.broadcast %cst_12 : f32 to vector<128x256xf32>
    %21 = arith.cmpf ole, %19, %20 : vector<128x256xf32>
    %cst_13 = arith.constant 0.000000e+00 : f32
    %22 = vector.broadcast %cst_13 : f32 to vector<128x256xf32>
    %23 = arith.select %21, %15, %22 : vector<128x256xi1>, vector<128x256xf32>
    %24 = arith.truncf %23 : vector<128x256xf32> to vector<128x256xbf16>
    %c0_14 = arith.constant 0 : index
    %c0_15 = arith.constant 0 : index
    %25 = vector.load %arg10[%c0_14, %c0_15] : memref<128x128xf32, #tpu.memory_space<vmem>>, vector<128x128xf32>
    %c0_16 = arith.constant 0 : index
    %c0_17 = arith.constant 0 : index
    %26 = vector.load %arg8[%c0_16, %c0_17] : memref<256x128xbf16, #tpu.memory_space<vmem>>, vector<256x128xbf16>
    %cst_18 = arith.constant dense<0.000000e+00> : vector<128x128xf32>
    %27 = tpu.matmul %24, %26, %cst_18 {dimension_numbers = #tpu.dot_dimension_numbers<[1], [0], [0], [1], [0, 0, 1, 1], [], []>} : vector<128x256xbf16>, vector<256x128xbf16>, vector<128x128xf32> -> vector<128x128xf32>
    %28 = arith.addf %25, %27 : vector<128x128xf32>
    %c0_19 = arith.constant 0 : index
    %c0_20 = arith.constant 0 : index
    %29 = vector.load %arg10[%c0_19, %c0_20] : memref<128x128xf32, #tpu.memory_space<vmem>>, vector<128x128xf32>
    tpu.vector_store %arg10[%c0_19, %c0_20], %28 {strides = array<i32>} : memref<128x128xf32, #tpu.memory_space<vmem>>, vector<128x128xf32>,
    %c1_i32 = arith.constant 1 : i32
    %30 = arith.cmpi eq, %arg1, %c1_i32 : i32
    %31 = arith.extui %30 : i1 to i32
    %c0_i32_21 = arith.constant 0 : i32
    %32 = arith.cmpi ne, %31, %c0_i32_21 : i32
    scf.if %32 {
      %c0_22 = arith.constant 0 : index
      %c0_23 = arith.constant 0 : index
      %33 = vector.load %arg10[%c0_22, %c0_23] : memref<128x128xf32, #tpu.memory_space<vmem>>, vector<128x128xf32>
      %c0_24 = arith.constant 0 : index
      %c0_25 = arith.constant 0 : index
      %34 = vector.load %arg9[%c0_24, %c0_25] : memref<128x128xf32, #tpu.memory_space<vmem>>, vector<128x128xf32>
      tpu.vector_store %arg9[%c0_24, %c0_25], %33 {strides = array<i32>} : memref<128x128xf32, #tpu.memory_space<vmem>>, vector<128x128xf32>,
    } else {
    }
    return
  }
  func.func @transform_0(%arg0: i32, %arg1: i32) -> (i32, i32) {
    %c0_i32 = arith.constant 0 : i32
    %c0_i32_0 = arith.constant 0 : i32
    return %arg0, %c0_i32 : i32, i32
  }
  func.func @transform_1(%arg0: i32, %arg1: i32) -> (i32, i32) {
    %c0_i32 = arith.constant 0 : i32
    %c0_i32_0 = arith.constant 0 : i32
    %c0_i32_1 = arith.constant 0 : i32
    return %c0_i32, %c0_i32_0 : i32, i32
  }
  func.func @transform_2(%arg0: i32, %arg1: i32) -> (i32, i32) {
    %c0_i32 = arith.constant 0 : i32
    %c0_i32_0 = arith.constant 0 : i32
    %c0_i32_1 = arith.constant 0 : i32
    return %c0_i32, %c0_i32_0 : i32, i32
  }
  func.func @transform_3(%arg0: i32, %arg1: i32) -> (i32, i32) {
    %c0_i32 = arith.constant 0 : i32
    %c0_i32_0 = arith.constant 0 : i32
    return %c0_i32, %arg1 : i32, i32
  }
  func.func @transform_4(%arg0: i32, %arg1: i32) -> (i32, i32) {
    %c0_i32 = arith.constant 0 : i32
    %c0_i32_0 = arith.constant 0 : i32
    return %c0_i32, %arg1 : i32, i32
  }
  func.func @transform_5(%arg0: i32, %arg1: i32) -> (i32, i32) {
    %c0_i32 = arith.constant 0 : i32
    %c0_i32_0 = arith.constant 0 : i32
    return %c0_i32, %arg1 : i32, i32
  }
  func.func @transform_6(%arg0: i32, %arg1: i32) -> (i32, i32) {
    %c0_i32 = arith.constant 0 : i32
    %c0_i32_0 = arith.constant 0 : i32
    return %arg1, %c0_i32 : i32, i32
  }
  func.func @transform_7(%arg0: i32, %arg1: i32) -> (i32, i32) {
    %c0_i32 = arith.constant 0 : i32
    %c0_i32_0 = arith.constant 0 : i32
    return %arg0, %c0_i32 : i32, i32
  }
}

</mosaic_0001>

<bundles_post_ra>
// kernel: tpu_custom_call.1
= control target key start
LH: loop header
LB: loop body
LE: loop exit
PB: predicated region body
PF: predicated region fallthrough
CT: control target
= control target key end

     0   :  { %s4244_s0 = inlined_call_operand.hbm [shape: bf16[256,128], index: 0, kind: input, shape index: {}]   ;;  %s4245_s1 = inlined_call_operand.hbm [shape: bf16[128,256], index: 1, kind: input, shape index: {}]   ;;  %s4246_s2 = inlined_call_operand.vmem [shape: f32[1,256], index: 2, kind: input, shape index: {}]   ;;  %s4247_s3 = inlined_call_operand.hbm [shape: bf16[128,512], index: 3, kind: input, shape index: {}]   ;;  %s4248_s4 = inlined_call_operand.hbm [shape: bf16[128,512], index: 4, kind: input, shape index: {}]   ;;  %s4249_s5 = inlined_call_operand.vmem [shape: f32[1,512], index: 5, kind: input, shape index: {}]   ;;  %s4250_s6 = inlined_call_operand.hbm [shape: bf16[512,128], index: 6, kind: input, shape index: {}]   ;;  %s4251_s7 = inlined_call_operand.hbm [shape: f32[256,128], index: 7, kind: output, shape index: {}]  }
   0x1   :  { %4272 = sst [smem:[#allocation31_spill]] %s4244_s0 }
   0x2   :  { %4273 = sst [smem:[#allocation32_spill]] %s4246_s2 }
   0x3   :  { %4274 = sst [smem:[#allocation33_spill]] %s4247_s3 }
   0x4   :  { %4275 = sst [smem:[#allocation34_spill]] %s4248_s4 }
   0x5   :  { %4276 = sst [smem:[#allocation35_spill]] %s4251_s7 }
   0x6   :  { %12 = vsyncpa [#allocation6], 0 }
   0x7   :  { %14 = vsyncpa [#allocation6 + $0x1], 0 }
   0x8   :  { %15 = vsyncpa [#allocation9], 0 }
   0x9   :  { %16 = vsyncpa [#allocation7], 0 }
   0xa   :  { %18 = vsyncpa [#allocation7 + $0x1], 0  ;;  %s3240_s24 = smov 0   ;;  %s3242_s25 = smov 0  }
   0xb   :  { %s3244_s26 = smov 0   ;;  %s3246_s27 = smov 0  }
   0xc   :  { %s3248_s28 = smov 0   ;;  %s3250_s29 = smov 0  }
   0xd   :  { %s3252_s30 = smov 0   ;;  %s3254_s8 = smov 0  }
   0xe   :  { %s3256_s9 = smov 0   ;;  %s3258_s10 = smov 0  }
   0xf   :  { %s3260_s11 = smov 0  }
  0x10 LB: > { %4277 = sst [smem:[#allocation18_spill]] %s3162_s29  ;;  %s33_s12 = sadd.s32 1, %s3174_s9  ;;  %s3182_s11 = sphi %s3260_s11, %s24_s11   ;;  %s3178_s10 = sphi %s3258_s10, %s4346_s10   ;;  %s3174_s9 = sphi %s3256_s9, %s4345_s9   ;;  %s3170_s8 = sphi %s3254_s8, %s4344_s8   ;;  %s3166_s30 = sphi %s3252_s30, %s4343_s30   ;;  %s3162_s29 = sphi %s3250_s29, %s4342_s29   ;;  %s3158_s28 = sphi %s3248_s28, %s4351_s28   ;;  %s3154_s27 = sphi %s3246_s27, %s4350_s27   ;;  %s3150_s26 = sphi %s3244_s26, %s4349_s26   ;;  %s3146_s25 = sphi %s3242_s25, %s4348_s25   ;;  %s3142_s24 = sphi %s3240_s24, %s4347_s24  }
  0x11   : > { %4278 = sst [smem:[#allocation19_spill]] %s3170_s8  ;;  %s36_s13 = sadd.s32 1, %s3178_s10 }
  0x12   : > { %4279 = sst [smem:[#allocation20_spill]] %s3174_s9  ;;  %p34_p0 = scmp.ge.s32.totalorder %s33_s12, 2 }
  0x13   : > { %4280 = sst [smem:[#allocation21_spill]] %s3178_s10  ;;  %s43_s14 = sadd.s32 1, %s3162_s29 }
  0x14   : > { %p4255_p1 = scmp.ne.s32.totalorder %s3162_s29, %s3158_s28  ;;  %p51_p2 = scmp.eq.s32.totalorder %s3182_s11, 0 }
  0x15   : > { %s4353_s12 = smov (%p34_p0, %s33_s12), 0  ;;  %s4355_s13 = smov (!%p34_p0, %s36_s13), %s3178_s10 }
  0x16   : > { %4281 = sst [smem:[#allocation22_spill]] %s4353_s12  ;;  %p3307_p3 = por %p51_p2, %p4255_p1 }
  0x17   : > { %s108_s16 = ssub.s32 %s3174_s9, %s4353_s12  ;;  %p38_p4 = scmp.ge.s32.totalorder %s4355_s13, 2 }
  0x18   : > { %p109_p5 = scmp.eq.s32.totalorder %s108_s16, 0  ;;  %s111_s17 = sadd.s32 1, %s3150_s26 }
  0x19   : > { %p118_p6 = scmp.ne.s32.totalorder %s3150_s26, %s3146_s25  ;;  %s4357_s13 = smov (%p38_p4, %s4355_s13), 0 }
  0x1a   : > { %4283 = sst [smem:[#allocation23_spill]] %s4357_s13  ;;  %s40_s19 = ssub.s32 %s3178_s10, %s4357_s13 }
  0x1b   : > { %s3319_s18 = scalar_select %p109_p5, %s3150_s26, %s111_s17  }
  0x1c   : > { %p3323_p7 = por %p118_p6, %p51_p2  ;;  %p41_p8 = scmp.eq.s32.totalorder %s40_s19, 0 }
  0x1d   : > { %p4256_p9 = scmp.lt.s32.totalorder %s3182_s11, 4  ;;  %s268_s21 = sand.u32 1, %s3182_s11  }
  0x1e   : > { %s3330_s22 = scalar_select %p41_p8, %s3162_s29, %s43_s14  }
  0x1f   : > { %s270_s23 = sand.u32 1, %s3162_s29   ;;  %s2441_s12 = sshll.u32 %s3178_s10, 10 }
  0x20   : > { %4285 = sst [smem:[#allocation24_spill]] %s3330_s22  ;;  %s2262_s16 = sshll.u32 %s270_s23, 6 }
  0x21   : > { %s4286_s0 = sld [smem:[#allocation31_spill]]  ;;  %s272_s17 = scalar_lea.vmem [#allocation5], %s2262_s16 }
  0x22   : > { %s279_s13 = sshll.u32 %s272_s17, 4  ;;  %p3343_p10 = pnand %p4256_p9, %p3307_p3  ;;  %s3347_s13 = int_to_ptr.vmem [resolvable:$true] %s279_s13 }
  0x23   : > { %s3349_s14 = scalar_lea.sflag [#allocation6], %s268_s21 }
  0x24   : > { %p2906_p12 = pneg %p3343_p10 }
  0x27   : > { %s3337_s2 = scalar_lea.hbm %s4286_s0, %s2441_s12  ;;  %s2909_s15 = scalar_lea.hbm %s4286_s0, 2048 }
  0x28   : > { %s2904_s7 = scalar_lea.hbm %s3337_s2, 1024  ;;  %p2910_p2 = scmp.lt.u32.totalorder %s3337_s2, %s4286_s0 }
  0x29   : > { %p2905_p11 = scmp.ne.s32.totalorder %s3337_s2, %s2904_s7  ;;  %p2911_p3 = scmp.lt.u32.totalorder %s2909_s15, %s2904_s7 }
  0x2a   : > { %p2913_p5 = scmp.lt.u32.totalorder %s2904_s7, %s3337_s2 }
  0x2b   : > { %p2907_p13 = pnand %p2906_p12, %p2905_p11  ;;  %p2912_p4 = por %p2911_p3, %p2910_p2 }
  0x2d   : > { %p2908_p0 = pneg %p2907_p13  ;;  %p2914_p6 = por %p2913_p5, %p2912_p4 }
  0x2f   : > { %p2915_p8 = pnand %p2914_p6, %p2908_p0 }
  0x31   : > { %2918 = shalt.err (!%p2915_p8)
}
  0x32   : > { %s2919_s21 = scalar_lea.vmem %s3347_s13, 1024  ;;  %s3184_s17 = smov [#allocation5]  }
  0x33   : > { %p2920_p11 = scmp.ne.s32.totalorder %s3347_s13, %s2919_s21  ;;  %s2924_s8 = sshll.u32 %s3184_s17, 4  ;;  %s2925_s8 = int_to_ptr.vmem [resolvable:$false] %s2924_s8 }
  0x34   : > { %s2926_s12 = scalar_lea.vmem %s2925_s8, 2048  ;;  %p2927_p9 = scmp.lt.s32.totalorder %s3347_s13, %s2925_s8 }
  0x35   : > { %p2922_p13 = pnand %p2920_p11, %p2906_p12  ;;  %p2928_p2 = scmp.lt.s32.totalorder %s2926_s12, %s2919_s21 }
  0x37   : > { %p2923_p1 = pneg %p2922_p13  ;;  %p2929_p3 = por %p2928_p2, %p2927_p9 }
  0x39   : > { %p2930_p4 = pnand %p2929_p3, %p2923_p1 }
  0x3b   : > { %2933 = shalt.err (!%p2930_p4)
}
  0x3c   : > { %s4257_s7 = smov 64   ;;  %s4258_s15 = smov 4  }
  0x3d   : > { %2563 = dma.hbm_to_vmem [thread:$0]  (!%p3343_p10), %s3337_s2, 1024, %s3347_s13, %s3349_s14, %s4257_s7, %s4257_s7, %s4258_s15  }
  0x3e   : > { %p4288_p9 = scmp.lt.s32.totalorder %s3182_s11, 4  ;;  %s291_s16 = sand.u32 1, %s3150_s26  }
  0x3f   : > { %s3389_s21 = sshll.u32 %s291_s16, 7  ;;  %s4259_s17 = sshll.u32 %s3174_s9, 7 }
  0x40   : > { %p3384_p1 = pnand %p4288_p9, %p3323_p7  ;;  %s4290_s3 = sld [smem:[#allocation33_spill]] }
  0x41   : > { %s293_s2 = scalar_lea.vmem [#allocation10], %s3389_s21 }
  0x42   : > { %s300_s13 = sshll.u32 %s293_s2, 4  ;;  %p3406_p10 = pneg %p3384_p1  ;;  %s3400_s13 = int_to_ptr.vmem [resolvable:$true] %s300_s13 }
  0x46   : > { %s3397_s19 = scalar_lea.hbm %s4290_s3, %s4259_s17  ;;  %s2939_s7 = scalar_lea.hbm %s4290_s3, 4096 }
  0x47   : > { %s2934_s20 = scalar_lea.hbm %s3397_s19, 2048  ;;  %p2940_p5 = scmp.lt.u32.totalorder %s3397_s19, %s4290_s3 }
  0x48   : > { %p2935_p7 = scmp.ne.s32.totalorder %s3397_s19, %s2934_s20  ;;  %p2941_p6 = scmp.lt.u32.totalorder %s2939_s7, %s2934_s20 }
  0x49   : > { %p2943_p11 = scmp.lt.u32.totalorder %s2934_s20, %s3397_s19 }
  0x4a   : > { %p2937_p12 = pnand %p3406_p10, %p2935_p7  ;;  %p2942_p8 = por %p2941_p6, %p2940_p5 }
  0x4c   : > { %p2938_p0 = pneg %p2937_p12  ;;  %p2944_p13 = por %p2943_p11, %p2942_p8 }
  0x4e   : > { %p2945_p2 = pnand %p2944_p13, %p2938_p0 }
  0x50   : > { %2948 = shalt.err (!%p2945_p2)
}
  0x51   : > { %s2949_s2 = scalar_lea.vmem %s3400_s13, 2048  ;;  %s3187_s8 = smov [#allocation10]  }
  0x52   : > { %p2950_p3 = scmp.ne.s32.totalorder %s3400_s13, %s2949_s2  ;;  %s2954_s12 = sshll.u32 %s3187_s8, 4  ;;  %s2955_s12 = int_to_ptr.vmem [resolvable:$false] %s2954_s12 }
  0x53   : > { %s2956_s15 = scalar_lea.vmem %s2955_s12, 4096  ;;  %p2957_p7 = scmp.lt.s32.totalorder %s3400_s13, %s2955_s12 }
  0x54   : > { %p2952_p4 = pnand %p2950_p3, %p3406_p10  ;;  %p2958_p12 = scmp.lt.s32.totalorder %s2956_s15, %s2949_s2 }
  0x56   : > { %p2953_p9 = pneg %p2952_p4  ;;  %p2959_p5 = por %p2958_p12, %p2957_p7 }
  0x58   : > { %p2960_p6 = pnand %p2959_p5, %p2953_p9 }
  0x5a   : > { %2963 = shalt.err (!%p2960_p6)
}
  0x5b   : > { %s4261_s7 = smov 256   ;;  %s4263_s17 = smov 128  }
  0x5c   : > { %s4264_s20 = smov 8   ;;  %s4292_s8 = sshll.u32 %s3174_s9, 7 }
  0x5d   : > { %2566 = dma.hbm_to_vmem [thread:$0]  (!%p3384_p1), %s3397_s19, 2048, %s3400_s13, %s3349_s14, %s4261_s7, %s4263_s17, %s4264_s20  }
  0x5e   : > { %s4293_s4 = sld [smem:[#allocation34_spill]]  ;;  %s314_s0 = scalar_lea.vmem [#allocation11], %s3389_s21 }
  0x5f   : > { %s321_s3 = sshll.u32 %s314_s0, 4  ;;  %s3441_s3 = int_to_ptr.vmem [resolvable:$true] %s321_s3 }
  0x64   : > { %s3438_s15 = scalar_lea.hbm %s4293_s4, %s4292_s8  ;;  %s2969_s7 = scalar_lea.hbm %s4293_s4, 4096 }
  0x65   : > { %s2964_s10 = scalar_lea.hbm %s3438_s15, 2048  ;;  %p2970_p13 = scmp.lt.u32.totalorder %s3438_s15, %s4293_s4 }
  0x66   : > { %p2965_p0 = scmp.ne.s32.totalorder %s3438_s15, %s2964_s10  ;;  %p2971_p2 = scmp.lt.u32.totalorder %s2969_s7, %s2964_s10 }
  0x67   : > { %p2973_p4 = scmp.lt.u32.totalorder %s2964_s10, %s3438_s15 }
  0x68   : > { %p2967_p8 = pnand %p2965_p0, %p3406_p10  ;;  %p2972_p3 = por %p2971_p2, %p2970_p13 }
  0x6a   : > { %p2968_p11 = pneg %p2967_p8  ;;  %p2974_p9 = por %p2973_p4, %p2972_p3 }
  0x6c   : > { %p2975_p7 = pnand %p2974_p9, %p2968_p11 }
  0x6e   : > { %2978 = shalt.err (!%p2975_p7)
}
  0x6f   : > { %s2979_s0 = scalar_lea.vmem %s3441_s3, 2048  ;;  %s3191_s12 = smov [#allocation11]  }
  0x70   : > { %p2980_p12 = scmp.ne.s32.totalorder %s3441_s3, %s2979_s0  ;;  %s2984_s19 = sshll.u32 %s3191_s12, 4  ;;  %s2985_s19 = int_to_ptr.vmem [resolvable:$false] %s2984_s19 }
  0x71   : > { %s2986_s13 = scalar_lea.vmem %s2985_s19, 4096  ;;  %p2987_p0 = scmp.lt.s32.totalorder %s3441_s3, %s2985_s19 }
  0x72   : > { %p2982_p5 = pnand %p2980_p12, %p3406_p10  ;;  %p2988_p8 = scmp.lt.s32.totalorder %s2986_s13, %s2979_s0 }
  0x74   : > { %p2983_p6 = pneg %p2982_p5  ;;  %p2989_p13 = por %p2988_p8, %p2987_p0 }
  0x76   : > { %p2990_p2 = pnand %p2989_p13, %p2983_p6 }
  0x78   : > { %2993 = shalt.err (!%p2990_p2)
}
  0x79   : > { %s4294_s10 = smov 256   ;;  %s3469_s7 = sadd.s32 4294967295, %s3182_s11  }
  0x7a   : > { %2569 = dma.hbm_to_vmem [thread:$0]  (!%p3384_p1), %s3438_s15, 2048, %s3441_s3, %s3349_s14, %s4294_s10, %s4263_s17, %s4264_s20  }
  0x7b   : > { %s2258_s2 = sadd.s32 4294967294, %s3182_s11   ;;  %p56_p11 = scmp.ne.s32.totalorder %s3158_s28, %s3154_s27 }
  0x7c   : > { %p4267_p3 = scmp.eq.s32.totalorder %s3469_s7, 0  ;;  %p124_p4 = scmp.ne.s32.totalorder %s3146_s25, %s3142_s24 }
  0x7d   : > { %p226_p9 = scmp.eq.s32.totalorder %s3469_s7, 3  ;;  %p232_p12 = scmp.eq.s32.totalorder %s2258_s2, 3 }
  0x7e   : > { %p3480_p7 = por %p4267_p3, %p56_p11  ;;  %p3486_p5 = por %p124_p4, %p4267_p3 }
  0x7f   : > { %p4297_p6 = scmp.ne.s32.totalorder %s3162_s29, %s3158_s28  ;;  %p3497_p8 = por %p232_p12, %p56_p11 }
  0x80   : > { %s4295_s8 = scalar_select %p3480_p7, 1, 0 }
  0x81   : > { %s4296_s3 = scalar_select %p3486_p5, 1, 0 }
  0x82   : > { %p3493_p0 = por %p226_p9, %p4297_p6  ;;  %p2259_p13 = scmp.ge.s32.totalorder %s3182_s11, 1 }
  0x83   : > { %s4299_s24 = scalar_select %p3497_p8, 1, 0 }
  0x84   : > { %s4298_s15 = scalar_select %p3493_p0, 1, 0 }
  0x85   : > { %p239_p2 = scmp.lt.s32.totalorder %s3182_s11, 5  ;;  %s3192_s12 = smov [#allocation8]  }
  0x86   : > { %s251_s19 = sshll.u32 %s3192_s12, 4  ;;  %s2444_s13 = sshll.u32 %s3174_s9, 11  ;;  %s3515_s19 = int_to_ptr.vmem [resolvable:$true] %s251_s19 }
  0x87   : > { %p3503_p7 = pnand %p2259_p13, %p239_p2  ;;  %s3513_s17 = scalar_lea.hbm %s4250_s6, %s2444_s13 }
  0x88   : > { %s343_s20 = scalar_lea.vmem [#allocation12], %s3389_s21  ;;  %s2994_s12 = scalar_lea.hbm %s3513_s17, 2048 }
  0x89   : > { %s4300_s0 = scalar_select %p3503_p7, 1, 0 }
  0x8a   : > { %p2556_p4 = pneg %p3503_p7  ;;  %s350_s4 = sshll.u32 %s343_s20, 4  ;;  %s3524_s4 = int_to_ptr.vmem [resolvable:$true] %s350_s4 }
  0x8b   : > { %p2995_p9 = scmp.ne.s32.totalorder %s3513_s17, %s2994_s12  ;;  %s2999_s2 = scalar_lea.hbm %s4250_s6, 4096 }
  0x8c   : > { %p3520_p11 = pnand %p2556_p4, %p4267_p3  ;;  %p3000_p13 = scmp.lt.u32.totalorder %s3513_s17, %s4250_s6 }
  0x8d   : > { %p2997_p12 = pnand %p2995_p9, %p3406_p10  ;;  %p3001_p2 = scmp.lt.u32.totalorder %s2999_s2, %s2994_s12 }
  0x8e   : > { %s4301_s22 = scalar_select %p3520_p11, 1, 0 }
  0x8f   : > { %p2998_p6 = pneg %p2997_p12  ;;  %p3002_p4 = por %p3001_p2, %p3000_p13 }
  0x90   : > { %p3003_p3 = scmp.lt.u32.totalorder %s2994_s12, %s3513_s17 }
  0x92   : > { %p3004_p8 = por %p3003_p3, %p3002_p4 }
  0x94   : > { %p3005_p0 = pnand %p3004_p8, %p2998_p6 }
  0x96   : > { %3008 = shalt.err (!%p3005_p0)
}
  0x97   : > { %s3009_s21 = scalar_lea.vmem %s3524_s4, 2048  ;;  %s3193_s20 = smov [#allocation12]  }
  0x98   : > { %p3010_p9 = scmp.ne.s32.totalorder %s3524_s4, %s3009_s21  ;;  %s3014_s13 = sshll.u32 %s3193_s20, 4  ;;  %s3015_s13 = int_to_ptr.vmem [resolvable:$false] %s3014_s13 }
  0x99   : > { %s3016_s29 = scalar_lea.vmem %s3015_s13, 4096  ;;  %p3017_p7 = scmp.lt.s32.totalorder %s3524_s4, %s3015_s13 }
  0x9a   : > { %p3012_p12 = pnand %p3010_p9, %p3406_p10  ;;  %p3018_p11 = scmp.lt.s32.totalorder %s3016_s29, %s3009_s21 }
  0x9c   : > { %p3013_p5 = pneg %p3012_p12  ;;  %p3019_p13 = por %p3018_p11, %p3017_p7 }
  0x9e   : > { %p3020_p2 = pnand %p3019_p13, %p3013_p5 }
  0xa0   : > { %3023 = shalt.err (!%p3020_p2)
}
  0xa1   : > { %s4302_s9 = smov 4   ;;  %s4303_s12 = smov 64  }
  0xa2   : > { %2572 = dma.hbm_to_vmem [thread:$0]  (!%p3384_p1), %s3513_s17, 2048, %s3524_s4, %s3349_s14, %s4303_s12, %s4303_s12, %s4302_s9  }
  0xa3   : > { %s3024_s2 = scalar_lea.hbm %s4245_s1, 2048  ;;  %p4304_p3 = scmp.ne.s32.totalorder %s4301_s22, 0 }
  0xa4   : > { %p3025_p10 = scmp.ne.s32.totalorder %s4245_s1, %s3024_s2  ;;  %p3031_p8 = scmp.lt.u32.totalorder %s3024_s2, %s4245_s1 }
  0xa5   : > { %p3026_p7 = pneg %p4304_p3 }
  0xa7   : > { %p3027_p5 = pnand %p3026_p7, %p3025_p10 }
  0xa9   : > { %p3028_p0 = pneg %p3027_p5 }
  0xab   : > { %p3033_p11 = pnand %p3031_p8, %p3028_p0 }
  0xad   : > { %3036 = shalt.err (!%p3033_p11)
}
  0xae   : > { %s3037_s4 = scalar_lea.vmem %s3515_s19, 2048  ;;  %p3045_p9 = scmp.lt.s32.totalorder %s3515_s19, %s3515_s19 }
  0xaf   : > { %p3038_p1 = scmp.ne.s32.totalorder %s3515_s19, %s3037_s4  ;;  %p3046_p12 = scmp.lt.s32.totalorder %s3037_s4, %s3037_s4 }
  0xb1   : > { %p3040_p6 = pnand %p3038_p1, %p3026_p7  ;;  %p3047_p13 = por %p3046_p12, %p3045_p9 }
  0xb3   : > { %p3041_p4 = pneg %p3040_p6 }
  0xb5   : > { %p3048_p2 = pnand %p3047_p13, %p3041_p4 }
  0xb7   : > { %3051 = shalt.err (!%p3048_p2)
}
  0xb8   : > { %s4305_s14 = smov 8   ;;  %s4306_s17 = smov 128  }
  0xb9   : > { %2559 = dma.hbm_to_vmem [thread:$0]  (!%p4304_p3), %s4245_s1, 2048, %s3515_s19, [#allocation9], %s4306_s17, %s4306_s17, %s4305_s14  }
  0xba   : > { %p4307_p10 = scmp.ne.s32.totalorder %s4300_s0, 0 }
  0xbc   : > { %362 = sbr.rel (%p4307_p10) target bundleno = 1140 (0x474), region = 48 }
  0xc3   : > { %s364_s12 = sand.u32 1, %s3469_s7   ;;  %s3579_s16 = sand.u32 1, %s3158_s28  }
  0xc4   : > { %s2275_s10 = sshll.u32 %s3579_s16, 6  ;;  %s365_s22 = scalar_lea.sflag [#allocation6], %s364_s12 }
  0xc5   : > { %s3582_s2 = scalar_lea.vmem [#allocation5], %s2275_s10  ;;  %p4308_p7 = scmp.ne.s32.totalorder %s4295_s8, 0 }
  0xc7   : > { %3125 = dma.done.wait (%p4308_p7), %s365_s22, 1024  }
  0xc8   : > { %3127 = vsyncadd (%p4308_p7), %s365_s22, 4294966272  ;;  %p4309_p3 = scmp.eq.s32.totalorder %s3469_s7, 0 }
  0xca   : > { %3129 = dma.done.wait (%p4309_p3), [#allocation9], 2048   ;;  %p4310_p5 = pmov %p4309_p3 }
  0xcb   : > { %s379_s0 = sand.u32 1, %s3146_s25   ;;  %p4311_p0 = scmp.ne.s32.totalorder %s4296_s3, 0 }
  0xcc   : > { %3131 = vsyncadd (%p4310_p5), [#allocation9], 4294965248  ;;  %s2277_s19 = sshll.u32 %s379_s0, 7 }
  0xcd   : > { %s3593_s20 = scalar_lea.vmem [#allocation10], %s2277_s19 }
  0xce   : > { %3133 = dma.done.wait (%p4311_p0), %s365_s22, 6144  }
  0xcf   : > { %3135 = vsyncadd (%p4311_p0), %s365_s22, 4294961152  ;;  %s2280_s8 = sshll.u32 %s3579_s16, 7  ;;  %s2281_s13 = sshll.u32 %s3166_s30, 1 }
  0xd0   : > { %p453_p8 = scmp.lt.s32.totalorder %s2281_s13, 3  ;;  %s3607_s4 = scalar_lea.vmem [#allocation11], %s2277_s19 }
  0xd1   : > { %s3609_s14 = scalar_lea.vmem [#allocation12], %s2277_s19  ;;  %s3611_s17 = scalar_lea.vmem [#allocation13], %s2280_s8 }
  0xd2   : > { %s4359_s13 = smov (!%p453_p8, %s2281_s13), 3  ;;  %p2282_p11 = scmp.ne.s32.totalorder %s3166_s30, 0 }
  0xd3   : > { %s455_s21 = scalar_lea.vmem %s4249_s5, %s4359_s13  ;;  %v2680_v0 = vld [vmem:[#allocation8 + $0x4] ss:$8 sps:$4 sm:$0xff] (!%p2282_p11)   ;;  %v2682_v1 = vld [vmem:[#allocation8] ss:$8 sps:$4 sm:$0xff] (!%p2282_p11)   ;;  %v3194_v2 = vmov (!%p2282_p11), 0   ;;  %v2708_v21 = vld [vmem:[%s3582_s2 + $0x10] sm:$0xff] (!%p2282_p11)   ;;  %v771_v26 = vlaneseq (!%p2282_p11) }
  0xd4   : > { %463 = sbr.rel (%p2282_p11) target bundleno = 499 (0x1f3), region = 72  ;;  %656 = vmatprep.mubr.bf16.mxu0 (!%p2282_p11), %v3194_v2  ;;  %696 = vmatprep.mubr.bf16.mxu1 (!%p2282_p11), %v3194_v2  ;;  %v2683_v3 = vld [vmem:[#allocation8 + $0x14] ss:$8 sps:$4 sm:$0xff] (!%p2282_p11)   ;;  %v2685_v4 = vld [vmem:[#allocation8 + $0x10] ss:$8 sps:$4 sm:$0xff] (!%p2282_p11)   ;;  %v2704_v17 = vld [vmem:[%s3582_s2] sm:$0xff] (!%p2282_p11)  }
  0xd5   : > { %624 = vmatprep.subr.bf16.mxu0 (!%p2282_p11), %v2680_v0  ;;  %2510 = vmatprep.subr.bf16.mxu1 (!%p2282_p11), %v2680_v0  ;;  %v2686_v5 = vld [vmem:[#allocation8 + $0x24] ss:$8 sps:$4 sm:$0xff] (!%p2282_p11)   ;;  %v2688_v6 = vld [vmem:[#allocation8 + $0x20] ss:$8 sps:$4 sm:$0xff] (!%p2282_p11)   ;;  %v2689_v7 = vld [vmem:[#allocation8 + $0x34] ss:$8 sps:$4 sm:$0xff] (!%p2282_p11)  }
  0xd6   : > { %625 = vmatpush1.bf16.msra.mxu0 (!%p2282_p11), %v2682_v1  ;;  %2518 = vmatpush1.bf16.msra.mxu1 (!%p2282_p11), %v2682_v1  ;;  %v2691_v8 = vld [vmem:[#allocation8 + $0x30] ss:$8 sps:$4 sm:$0xff] (!%p2282_p11)   ;;  %v2692_v9 = vld [vmem:[#allocation8 + $0x44] ss:$8 sps:$4 sm:$0xff] (!%p2282_p11)   ;;  %v2694_v10 = vld [vmem:[#allocation8 + $0x40] ss:$8 sps:$4 sm:$0xff] (!%p2282_p11)  }
  0xd7   : > { %626 = vmatprep.subr.bf16.mxu0 (!%p2282_p11), %v2683_v3  ;;  %2511 = vmatprep.subr.bf16.mxu1 (!%p2282_p11), %v2683_v3  ;;  %v2695_v11 = vld [vmem:[#allocation8 + $0x54] ss:$8 sps:$4 sm:$0xff] (!%p2282_p11)   ;;  %v2697_v12 = vld [vmem:[#allocation8 + $0x50] ss:$8 sps:$4 sm:$0xff] (!%p2282_p11)   ;;  %v2698_v13 = vld [vmem:[#allocation8 + $0x64] ss:$8 sps:$4 sm:$0xff] (!%p2282_p11)  }
  0xd8   : > { %v2700_v14 = vld [vmem:[#allocation8 + $0x60] ss:$8 sps:$4 sm:$0xff] (!%p2282_p11)   ;;  %v2701_v15 = vld [vmem:[#allocation8 + $0x74] ss:$8 sps:$4 sm:$0xff] (!%p2282_p11)   ;;  %v2703_v16 = vld [vmem:[#allocation8 + $0x70] ss:$8 sps:$4 sm:$0xff] (!%p2282_p11)  }
  0xd9   : > { %v2705_v18 = vld [vmem:[%s3582_s2 + $0x20] sm:$0xff] (!%p2282_p11)   ;;  %v2706_v19 = vld [vmem:[%s3582_s2 + $0x8] sm:$0xff] (!%p2282_p11)   ;;  %v2709_v22 = vld [vmem:[%s3582_s2 + $0x30] sm:$0xff] (!%p2282_p11)   ;;  %v3195_v25 = vmov (!%p2282_p11), 0.0   ;;  %v772_v27 = vshrl.u32 (!%p2282_p11), %v771_v26, 7  ;;  %s4312_s9 = sld [smem:[#allocation32_spill]] (!%p2282_p11) }
  0xda   : > { %627 = vmatpush1.bf16.msra.mxu0 (!%p2282_p11), %v2685_v4  ;;  %2519 = vmatpush1.bf16.msra.mxu1 (!%p2282_p11), %v2685_v4  ;;  %v2707_v20 = vld [vmem:[%s3582_s2 + $0x28] sm:$0xff] (!%p2282_p11)   ;;  %v2710_v23 = vld [vmem:[%s3582_s2 + $0x18] sm:$0xff] (!%p2282_p11)   ;;  %909 = vst [vmem:[#allocation2] sm:$0xff] (!%p2282_p11), %v3195_v25  ;;  %910 = vst [vmem:[#allocation2 + $0x8] sm:$0xff] (!%p2282_p11), %v3195_v25 }
  0xdb   : > { %628 = vmatprep.subr.bf16.mxu0 %v2686_v5  ;;  %2512 = vmatprep.subr.bf16.mxu1 %v2686_v5  ;;  %v2711_v24 = vld [vmem:[%s3582_s2 + $0x38] sm:$0xff]   ;;  %911 = vst [vmem:[#allocation2 + $0x10] sm:$0xff] %v3195_v25  ;;  %912 = vst [vmem:[#allocation2 + $0x18] sm:$0xff] %v3195_v25  ;;  %v773_v28 = vsub.s32 0, %v772_v27  ;;  %v777_v30 = vsub.s32 1, %v772_v27 }
  0xdc   : > { %913 = vst [vmem:[#allocation2 + $0x20] sm:$0xff] %v3195_v25  ;;  %914 = vst [vmem:[#allocation2 + $0x28] sm:$0xff] %v3195_v25 }
  0xdd   : > { %915 = vst [vmem:[#allocation2 + $0x30] sm:$0xff] %v3195_v25  ;;  %916 = vst [vmem:[#allocation2 + $0x38] sm:$0xff] %v3195_v25 }
  0xde   : > { %629 = vmatpush1.bf16.msra.mxu0 %v2688_v6  ;;  %2520 = vmatpush1.bf16.msra.mxu1 %v2688_v6  ;;  %917 = vst [vmem:[#allocation2 + $0x40] sm:$0xff] %v3195_v25  ;;  %918 = vst [vmem:[#allocation2 + $0x48] sm:$0xff] %v3195_v25 }
  0xdf   : > { %630 = vmatprep.subr.bf16.mxu0 %v2689_v7  ;;  %2513 = vmatprep.subr.bf16.mxu1 %v2689_v7  ;;  %919 = vst [vmem:[#allocation2 + $0x50] sm:$0xff] %v3195_v25  ;;  %920 = vst [vmem:[#allocation2 + $0x58] sm:$0xff] %v3195_v25  ;;  %v769_v29 = vld [vmem:[%s4312_s9] sm:$0x3] }
  0xe0   : > { %921 = vst [vmem:[#allocation2 + $0x60] sm:$0xff] %v3195_v25  ;;  %922 = vst [vmem:[#allocation2 + $0x68] sm:$0xff] %v3195_v25  ;;  %v3633_v31 = vrot.slane %v769_v29, %v773_v28  ;;  %v3635_v34 = vrot.slane %v769_v29, %v777_v30 }
  0xe1   : > { %923 = vst [vmem:[#allocation2 + $0x70] sm:$0xff] %v3195_v25  ;;  %924 = vst [vmem:[#allocation2 + $0x78] sm:$0xff] %v3195_v25 }
  0xe2   : > { %631 = vmatpush1.bf16.msra.mxu0 %v2691_v8  ;;  %2521 = vmatpush1.bf16.msra.mxu1 %v2691_v8 }
  0xe3   : > { %632 = vmatprep.subr.bf16.mxu0 %v2692_v9  ;;  %2514 = vmatprep.subr.bf16.mxu1 %v2692_v9 }
  0xe6   : > { %633 = vmatpush1.bf16.msra.mxu0 %v2694_v10  ;;  %2522 = vmatpush1.bf16.msra.mxu1 %v2694_v10 }
  0xe7   : > { %634 = vmatprep.subr.bf16.mxu0 %v2695_v11  ;;  %2515 = vmatprep.subr.bf16.mxu1 %v2695_v11 }
  0xea   : > { %635 = vmatpush1.bf16.msra.mxu0 %v2697_v12  ;;  %2523 = vmatpush1.bf16.msra.mxu1 %v2697_v12 }
  0xeb   : > { %636 = vmatprep.subr.bf16.mxu0 %v2698_v13  ;;  %2516 = vmatprep.subr.bf16.mxu1 %v2698_v13 }
  0xee   : > { %637 = vmatpush1.bf16.msra.mxu0 %v2700_v14  ;;  %2524 = vmatpush1.bf16.msra.mxu1 %v2700_v14 }
  0xef   : > { %638 = vmatprep.subr.bf16.mxu0 %v2701_v15  ;;  %2517 = vmatprep.subr.bf16.mxu1 %v2701_v15 }
  0xf2   : > { %639 = vmatpush1.bf16.msra.mxu0 %v2703_v16  ;;  %2525 = vmatpush1.bf16.msra.mxu1 %v2703_v16 }
  0xf5   : > { %657 = vmatmul.mubr.bf16.vlgmr.msra.gmra.mrb[0].mxu0 %v2704_v17  ;;  %697 = vmatmul.mubr.bf16.vlgmr.msra.gmra.mrb[0].mxu1 %v2705_v18 }
  0xf6   : > { %666 = vmatprep.mubr.bf16.mxu0 %v3194_v2  ;;  %706 = vmatprep.mubr.bf16.mxu1 %v3194_v2 }
  0xfd   : > { %667 = vmatmul.mubr.bf16.gmra.mrb[4].mxu0 %v2706_v19  ;;  %707 = vmatmul.mubr.bf16.gmra.mrb[4].mxu1 %v2707_v20 }
  0xfe   : > { %676 = vmatprep.mubr.bf16.mxu0 %v3194_v2  ;;  %716 = vmatprep.mubr.bf16.mxu1 %v3194_v2 }
 0x105   : > { %677 = vmatmul.mubr.bf16.gmra.mrb[8].mxu0 %v2708_v21  ;;  %717 = vmatmul.mubr.bf16.gmra.mrb[8].mxu1 %v2709_v22 }
 0x106   : > { %686 = vmatprep.mubr.bf16.mxu0 %v3194_v2  ;;  %726 = vmatprep.mubr.bf16.mxu1 %v3194_v2 }
 0x10d   : > { %687 = vmatmul.mubr.bf16.gmra.mrb[12].mxu0 %v2710_v23  ;;  %727 = vmatmul.mubr.bf16.gmra.mrb[12].mxu1 %v2711_v24 }
 0x1c8   : > { %v658_v32 = vpop.f32.mrb[0].mxu0  ;;  %v698_v33 = vpop.f32.mrb[0].mxu1 }
 0x1c9   : > { %v737_v35 = vand.u32 2147483647, %v658_v32  ;;  %v753_v36 = vand.u32 2147483647, %v698_v33  ;;  %v660_v37 = vpop.f32.mrb[1].mxu0  ;;  %v700_v38 = vpop.f32.mrb[1].mxu1 }
 0x1ca   : > { %v738_v39 = vand.u32 2147483647, %v660_v37  ;;  %v754_v40 = vand.u32 2147483647, %v700_v38  ;;  %v662_v41 = vpop.f32.mrb[2].mxu0  ;;  %v702_v42 = vpop.f32.mrb[2].mxu1 }
 0x1cb   : > { %v781_v43 = vmul.f32 %v3633_v31, %v737_v35  ;;  %v797_v44 = vmul.f32 %v3633_v31, %v753_v36  ;;  %v739_v45 = vand.u32 2147483647, %v662_v41  ;;  %v755_v46 = vand.u32 2147483647, %v702_v42  ;;  %v664_v47 = vpop.f32.mrb[3].mxu0  ;;  %v704_v48 = vpop.f32.mrb[3].mxu1 }
 0x1cc   : > { %v782_v49 = vmul.f32 %v3635_v34, %v738_v39  ;;  %v798_v50 = vmul.f32 %v3635_v34, %v754_v40  ;;  %v740_v51 = vand.u32 2147483647, %v664_v47  ;;  %v756_v52 = vand.u32 2147483647, %v704_v48 }
 0x1cd   : > { %vm813_vm0 = vcmp.le.f32.partialorder %v781_v43, 1.0  ;;  %vm829_vm1 = vcmp.le.f32.partialorder %v797_v44, 1.0  ;;  %v783_v53 = vmul.f32 %v3633_v31, %v739_v45  ;;  %v799_v54 = vmul.f32 %v3633_v31, %v755_v46 }
 0x1ce   : > { %v845_v55 = vsel %vm813_vm0, %v658_v32, 0.0  ;;  %v861_v56 = vsel %vm829_vm1, %v698_v33, 0.0  ;;  %vm814_vm2 = vcmp.le.f32.partialorder %v782_v49, 1.0  ;;  %vm830_vm3 = vcmp.le.f32.partialorder %v798_v50, 1.0 }
 0x1cf   : > { %v846_v57 = vsel %vm814_vm2, %v660_v37, 0.0  ;;  %v862_v58 = vsel %vm830_vm3, %v700_v38, 0.0  ;;  %vm815_vm4 = vcmp.le.f32.partialorder %v783_v53, 1.0  ;;  %vm831_vm5 = vcmp.le.f32.partialorder %v799_v54, 1.0 }
 0x1d0   : > { %v847_v59 = vsel %vm815_vm4, %v662_v41, 0.0  ;;  %v863_v60 = vsel %vm831_vm5, %v702_v42, 0.0  ;;  %v784_v61 = vmul.f32 %v3635_v34, %v740_v51  ;;  %v800_v62 = vmul.f32 %v3635_v34, %v756_v52  ;;  %v668_v63 = vpop.f32.mrb[4].mxu0  ;;  %v708_v0 = vpop.f32.mrb[4].mxu1 }
 0x1d1   : > { %v877_v1 = vpack.c.bf16 %v847_v59, %v845_v55  ;;  %v885_v2 = vpack.c.bf16 %v863_v60, %v861_v56  ;;  %v741_v3 = vand.u32 2147483647, %v668_v63  ;;  %v757_v4 = vand.u32 2147483647, %v708_v0  ;;  %v670_v5 = vpop.f32.mrb[5].mxu0  ;;  %v710_v6 = vpop.f32.mrb[5].mxu1 }
 0x1d2   : > { %vm816_vm6 = vcmp.le.f32.partialorder %v784_v61, 1.0  ;;  %vm832_vm7 = vcmp.le.f32.partialorder %v800_v62, 1.0  ;;  %v742_v7 = vand.u32 2147483647, %v670_v5  ;;  %v758_v8 = vand.u32 2147483647, %v710_v6 }
 0x1d3   : > { %893 = vst [vmem:[#allocation3] sm:$0xff] %v877_v1  ;;  %897 = vst [vmem:[#allocation3 + $0x20] sm:$0xff] %v885_v2  ;;  %v848_v9 = vsel %vm816_vm6, %v664_v47, 0.0  ;;  %v864_v10 = vsel %vm832_vm7, %v704_v48, 0.0  ;;  %v785_v11 = vmul.f32 %v3633_v31, %v741_v3  ;;  %v801_v12 = vmul.f32 %v3633_v31, %v757_v4  ;;  %v672_v13 = vpop.f32.mrb[6].mxu0  ;;  %v712_v14 = vpop.f32.mrb[6].mxu1 }
 0x1d4   : > { %v878_v15 = vpack.c.bf16 %v848_v9, %v846_v57  ;;  %v886_v16 = vpack.c.bf16 %v864_v10, %v862_v58  ;;  %v786_v17 = vmul.f32 %v3635_v34, %v742_v7  ;;  %v802_v18 = vmul.f32 %v3635_v34, %v758_v8  ;;  %v674_v19 = vpop.f32.mrb[7].mxu0  ;;  %v714_v20 = vpop.f32.mrb[7].mxu1 }
 0x1d5   : > { %vm817_vm8 = vcmp.le.f32.partialorder %v785_v11, 1.0  ;;  %vm833_vm9 = vcmp.le.f32.partialorder %v801_v12, 1.0  ;;  %v743_v21 = vand.u32 2147483647, %v672_v13  ;;  %v759_v22 = vand.u32 2147483647, %v712_v14 }
 0x1d6   : > { %901 = vst [vmem:[#allocation4] sm:$0xff] %v878_v15  ;;  %905 = vst [vmem:[#allocation4 + $0x20] sm:$0xff] %v886_v16  ;;  %v849_v23 = vsel %vm817_vm8, %v668_v63, 0.0  ;;  %v865_v24 = vsel %vm833_vm9, %v708_v0, 0.0  ;;  %vm818_vm10 = vcmp.le.f32.partialorder %v786_v17, 1.0  ;;  %vm834_vm11 = vcmp.le.f32.partialorder %v802_v18, 1.0 }
 0x1d7   : > { %v850_v25 = vsel %vm818_vm10, %v670_v5, 0.0  ;;  %v866_v26 = vsel %vm834_vm11, %v710_v6, 0.0  ;;  %v787_v27 = vmul.f32 %v3633_v31, %v743_v21  ;;  %v803_v28 = vmul.f32 %v3633_v31, %v759_v22 }
 0x1d8   : > { %v744_v29 = vand.u32 2147483647, %v674_v19  ;;  %v760_v30 = vand.u32 2147483647, %v714_v20  ;;  %v678_v32 = vpop.f32.mrb[8].mxu0  ;;  %v718_v33 = vpop.f32.mrb[8].mxu1 }
 0x1d9   : > { %vm819_vm12 = vcmp.le.f32.partialorder %v787_v27, 1.0  ;;  %vm835_vm13 = vcmp.le.f32.partialorder %v803_v28, 1.0  ;;  %v745_v35 = vand.u32 2147483647, %v678_v32  ;;  %v761_v36 = vand.u32 2147483647, %v718_v33 }
 0x1da   : > { %v851_v37 = vsel %vm819_vm12, %v672_v13, 0.0  ;;  %v867_v38 = vsel %vm835_vm13, %v712_v14, 0.0  ;;  %v788_v39 = vmul.f32 %v3635_v34, %v744_v29  ;;  %v804_v40 = vmul.f32 %v3635_v34, %v760_v30  ;;  %v680_v41 = vpop.f32.mrb[9].mxu0  ;;  %v720_v42 = vpop.f32.mrb[9].mxu1 }
 0x1db   : > { %v879_v43 = vpack.c.bf16 %v851_v37, %v849_v23  ;;  %v887_v44 = vpack.c.bf16 %v867_v38, %v865_v24  ;;  %v789_v45 = vmul.f32 %v3633_v31, %v745_v35  ;;  %v805_v46 = vmul.f32 %v3633_v31, %v761_v36  ;;  %v682_v47 = vpop.f32.mrb[10].mxu0  ;;  %v722_v48 = vpop.f32.mrb[10].mxu1 }
 0x1dc   : > { %vm820_vm14 = vcmp.le.f32.partialorder %v788_v39, 1.0  ;;  %vm836_vm15 = vcmp.le.f32.partialorder %v804_v40, 1.0  ;;  %v746_v49 = vand.u32 2147483647, %v680_v41  ;;  %v762_v50 = vand.u32 2147483647, %v720_v42 }
 0x1dd   : > { %894 = vst [vmem:[#allocation3 + $0x8] sm:$0xff] %v879_v43  ;;  %898 = vst [vmem:[#allocation3 + $0x28] sm:$0xff] %v887_v44  ;;  %v852_v51 = vsel %vm820_vm14, %v674_v19, 0.0  ;;  %v868_v52 = vsel %vm836_vm15, %v714_v20, 0.0  ;;  %vm821_vm0 = vcmp.le.f32.partialorder %v789_v45, 1.0  ;;  %vm837_vm1 = vcmp.le.f32.partialorder %v805_v46, 1.0 }
 0x1de   : > { %v684_v53 = vpop.f32.mrb[11].mxu0  ;;  %v724_v54 = vpop.f32.mrb[11].mxu1  ;;  %v880_v55 = vpack.c.bf16 %v852_v51, %v850_v25  ;;  %v888_v56 = vpack.c.bf16 %v868_v52, %v866_v26  ;;  %v853_v57 = vsel %vm821_vm0, %v678_v32, 0.0  ;;  %v869_v58 = vsel %vm837_vm1, %v718_v33, 0.0 }
 0x1df   : > { %v790_v59 = vmul.f32 %v3635_v34, %v746_v49  ;;  %v806_v60 = vmul.f32 %v3635_v34, %v762_v50  ;;  %v747_v61 = vand.u32 2147483647, %v682_v47  ;;  %v763_v62 = vand.u32 2147483647, %v722_v48 }
 0x1e0   : > { %902 = vst [vmem:[#allocation4 + $0x8] sm:$0xff] %v880_v55  ;;  %906 = vst [vmem:[#allocation4 + $0x28] sm:$0xff] %v888_v56  ;;  %v748_v63 = vand.u32 2147483647, %v684_v53  ;;  %v764_v0 = vand.u32 2147483647, %v724_v54 }
 0x1e1   : > { %v688_v1 = vpop.f32.mrb[12].mxu0  ;;  %v728_v2 = vpop.f32.mrb[12].mxu1  ;;  %vm822_vm2 = vcmp.le.f32.partialorder %v790_v59, 1.0  ;;  %vm838_vm3 = vcmp.le.f32.partialorder %v806_v60, 1.0  ;;  %v791_v3 = vmul.f32 %v3633_v31, %v747_v61  ;;  %v807_v4 = vmul.f32 %v3633_v31, %v763_v62 }
 0x1e2   : > { %v690_v5 = vpop.f32.mrb[13].mxu0  ;;  %v730_v6 = vpop.f32.mrb[13].mxu1  ;;  %v854_v7 = vsel %vm822_vm2, %v680_v41, 0.0  ;;  %v870_v8 = vsel %vm838_vm3, %v720_v42, 0.0  ;;  %v792_v9 = vmul.f32 %v3635_v34, %v748_v63  ;;  %v808_v10 = vmul.f32 %v3635_v34, %v764_v0 }
 0x1e3   : > { %v692_v11 = vpop.f32.mrb[14].mxu0  ;;  %v732_v12 = vpop.f32.mrb[14].mxu1  ;;  %vm823_vm4 = vcmp.le.f32.partialorder %v791_v3, 1.0  ;;  %vm839_vm5 = vcmp.le.f32.partialorder %v807_v4, 1.0  ;;  %v749_v13 = vand.u32 2147483647, %v688_v1 }
 0x1e4   : > { %v765_v14 = vand.u32 2147483647, %v728_v2  ;;  %v855_v15 = vsel %vm823_vm4, %v682_v47, 0.0  ;;  %v871_v16 = vsel %vm839_vm5, %v722_v48, 0.0  ;;  %vm824_vm6 = vcmp.le.f32.partialorder %v792_v9, 1.0  ;;  %v694_v17 = vpop.f32.mrb[15].mxu0 }
 0x1e5   : > { %vm840_vm7 = vcmp.le.f32.partialorder %v808_v10, 1.0  ;;  %v734_v18 = vpop.f32.mrb[15].mxu1  ;;  %v881_v19 = vpack.c.bf16 %v855_v15, %v853_v57  ;;  %v889_v20 = vpack.c.bf16 %v871_v16, %v869_v58  ;;  %v856_v21 = vsel %vm824_vm6, %v684_v53, 0.0 }
 0x1e6   : > { %v872_v22 = vsel %vm840_vm7, %v724_v54, 0.0  ;;  %v882_v23 = vpack.c.bf16 %v856_v21, %v854_v7  ;;  %v793_v25 = vmul.f32 %v3633_v31, %v749_v13  ;;  %v809_v26 = vmul.f32 %v3633_v31, %v765_v14 }
 0x1e7   : > { %v890_v24 = vpack.c.bf16 %v872_v22, %v870_v8  ;;  %895 = vst [vmem:[#allocation3 + $0x10] sm:$0xff] %v881_v19  ;;  %899 = vst [vmem:[#allocation3 + $0x30] sm:$0xff] %v889_v20  ;;  %v750_v27 = vand.u32 2147483647, %v690_v5  ;;  %v766_v28 = vand.u32 2147483647, %v730_v6 }
 0x1e8   : > { %v751_v29 = vand.u32 2147483647, %v692_v11  ;;  %903 = vst [vmem:[#allocation4 + $0x10] sm:$0xff] %v882_v23  ;;  %vm825_vm8 = vcmp.le.f32.partialorder %v793_v25, 1.0  ;;  %v767_v30 = vand.u32 2147483647, %v732_v12 }
 0x1e9   : > { %907 = vst [vmem:[#allocation4 + $0x30] sm:$0xff] %v890_v24  ;;  %v752_v32 = vand.u32 2147483647, %v694_v17  ;;  %vm841_vm9 = vcmp.le.f32.partialorder %v809_v26, 1.0  ;;  %v794_v33 = vmul.f32 %v3635_v34, %v750_v27  ;;  %v810_v35 = vmul.f32 %v3635_v34, %v766_v28 }
 0x1ea   : > { %v795_v36 = vmul.f32 %v3633_v31, %v751_v29  ;;  %v811_v37 = vmul.f32 %v3633_v31, %v767_v30  ;;  %v768_v39 = vand.u32 2147483647, %v734_v18  ;;  %v857_v40 = vsel %vm825_vm8, %v688_v1, 0.0 }
 0x1eb   : > { %v796_v38 = vmul.f32 %v3635_v34, %v752_v32  ;;  %vm826_vm10 = vcmp.le.f32.partialorder %v794_v33, 1.0  ;;  %v873_v41 = vsel %vm841_vm9, %v728_v2, 0.0  ;;  %vm842_vm11 = vcmp.le.f32.partialorder %v810_v35, 1.0 }
 0x1ec   : > { %vm827_vm12 = vcmp.le.f32.partialorder %v795_v36, 1.0  ;;  %vm843_vm13 = vcmp.le.f32.partialorder %v811_v37, 1.0  ;;  %v812_v44 = vmul.f32 %v3635_v34, %v768_v39  ;;  %v858_v45 = vsel %vm826_vm10, %v690_v5, 0.0 }
 0x1ed   : > { %v859_v42 = vsel %vm827_vm12, %v692_v11, 0.0  ;;  %v875_v43 = vsel %vm843_vm13, %v732_v12, 0.0  ;;  %vm828_vm14 = vcmp.le.f32.partialorder %v796_v38, 1.0  ;;  %v874_v31 = vsel %vm842_vm11, %v730_v6, 0.0 }
 0x1ee   : > { %v883_v46 = vpack.c.bf16 %v859_v42, %v857_v40  ;;  %v891_v47 = vpack.c.bf16 %v875_v43, %v873_v41  ;;  %v860_v48 = vsel %vm828_vm14, %v694_v17, 0.0  ;;  %vm844_vm15 = vcmp.le.f32.partialorder %v812_v44, 1.0 }
 0x1ef   : > { %v884_v49 = vpack.c.bf16 %v860_v48, %v858_v45  ;;  %v876_v50 = vsel %vm844_vm15, %v734_v18, 0.0 }
 0x1f0   : > { %896 = vst [vmem:[#allocation3 + $0x18] sm:$0xff] %v883_v46  ;;  %900 = vst [vmem:[#allocation3 + $0x38] sm:$0xff] %v891_v47  ;;  %v892_v51 = vpack.c.bf16 %v876_v50, %v874_v31 }
 0x1f1   : > { %904 = vst [vmem:[#allocation4 + $0x18] sm:$0xff] %v884_v49 }
 0x1f2   : > { %908 = vst [vmem:[#allocation4 + $0x38] sm:$0xff] %v892_v51 }
 0x1f3 PF: > { %v2712_v34 = vld [vmem:[%s3593_s20 + $0x4] ss:$8 sps:$4 sm:$0xff]   ;;  %v2714_v52 = vld [vmem:[%s3593_s20] ss:$8 sps:$4 sm:$0xff]   ;;  %v3196_v53 = vmov 0   ;;  %v931_v17 = vld [vmem:[#allocation3 + $0x30] sm:$0xff] }
 0x1f4   : > { %1101 = vmatprep.mubr.bf16.mxu1 %v3196_v53  ;;  %1061 = vmatprep.mubr.bf16.mxu0 %v3196_v53  ;;  %v2715_v54 = vld [vmem:[%s3593_s20 + $0x14] ss:$8 sps:$4 sm:$0xff]   ;;  %v2717_v55 = vld [vmem:[%s3593_s20 + $0x10] ss:$8 sps:$4 sm:$0xff]   ;;  %v2718_v56 = vld [vmem:[%s3593_s20 + $0x24] ss:$8 sps:$4 sm:$0xff]  }
 0x1f5   : > { %2526 = vmatprep.subr.bf16.mxu1 %v2712_v34  ;;  %1029 = vmatprep.subr.bf16.mxu0 %v2712_v34  ;;  %v2720_v57 = vld [vmem:[%s3593_s20 + $0x20] ss:$8 sps:$4 sm:$0xff]   ;;  %v2721_v58 = vld [vmem:[%s3593_s20 + $0x34] ss:$8 sps:$4 sm:$0xff]   ;;  %v2723_v59 = vld [vmem:[%s3593_s20 + $0x30] ss:$8 sps:$4 sm:$0xff]  }
 0x1f6   : > { %2534 = vmatpush1.bf16.msra.mxu1 %v2714_v52  ;;  %1030 = vmatpush1.bf16.msra.mxu0 %v2714_v52  ;;  %v2724_v60 = vld [vmem:[%s3593_s20 + $0x44] ss:$8 sps:$4 sm:$0xff]   ;;  %v2726_v61 = vld [vmem:[%s3593_s20 + $0x40] ss:$8 sps:$4 sm:$0xff]   ;;  %v2727_v62 = vld [vmem:[%s3593_s20 + $0x54] ss:$8 sps:$4 sm:$0xff]  }
 0x1f7   : > { %2527 = vmatprep.subr.bf16.mxu1 %v2715_v54  ;;  %1031 = vmatprep.subr.bf16.mxu0 %v2715_v54  ;;  %v2729_v63 = vld [vmem:[%s3593_s20 + $0x50] ss:$8 sps:$4 sm:$0xff]   ;;  %v2730_v0 = vld [vmem:[%s3593_s20 + $0x64] ss:$8 sps:$4 sm:$0xff]   ;;  %v2732_v1 = vld [vmem:[%s3593_s20 + $0x60] ss:$8 sps:$4 sm:$0xff]  }
 0x1f8   : > { %v2733_v2 = vld [vmem:[%s3593_s20 + $0x74] ss:$8 sps:$4 sm:$0xff]   ;;  %v2735_v3 = vld [vmem:[%s3593_s20 + $0x70] ss:$8 sps:$4 sm:$0xff]   ;;  %v2738_v4 = vld [vmem:[%s3607_s4 + $0x4] ss:$8 sps:$4 sm:$0xff]  }
 0x1f9   : > { %v929_v5 = vld [vmem:[#allocation3 + $0x20] sm:$0xff]  ;;  %v2741_v8 = vld [vmem:[%s3607_s4 + $0x14] ss:$8 sps:$4 sm:$0xff]   ;;  %v2739_v9 = vld [vmem:[%s3607_s4 + $0x10] ss:$8 sps:$4 sm:$0xff]   ;;  %p2435_p1 = scmp.ne.s32.totalorder %s3166_s30, 1 }
 0x1fa   : > { %2535 = vmatpush1.bf16.msra.mxu1 %v2717_v55  ;;  %1032 = vmatpush1.bf16.msra.mxu0 %v2717_v55  ;;  %v2736_v6 = vld [vmem:[%s3607_s4] ss:$8 sps:$4 sm:$0xff]   ;;  %v2744_v10 = vld [vmem:[%s3607_s4 + $0x24] ss:$8 sps:$4 sm:$0xff]   ;;  %v2747_v14 = vld [vmem:[%s3607_s4 + $0x34] ss:$8 sps:$4 sm:$0xff]  }
 0x1fb   : > { %2528 = vmatprep.subr.bf16.mxu1 %v2718_v56  ;;  %1033 = vmatprep.subr.bf16.mxu0 %v2718_v56  ;;  %v925_v7 = vld [vmem:[#allocation3] sm:$0xff]  ;;  %v930_v11 = vld [vmem:[#allocation3 + $0x28] sm:$0xff]  ;;  %v2745_v15 = vld [vmem:[%s3607_s4 + $0x30] ss:$8 sps:$4 sm:$0xff]  }
 0x1fc   : > { %v2742_v12 = vld [vmem:[%s3607_s4 + $0x20] ss:$8 sps:$4 sm:$0xff]   ;;  %v2750_v16 = vld [vmem:[%s3607_s4 + $0x44] ss:$8 sps:$4 sm:$0xff]   ;;  %v927_v19 = vld [vmem:[#allocation3 + $0x10] sm:$0xff] }
 0x1fd   : > { %v926_v13 = vld [vmem:[#allocation3 + $0x8] sm:$0xff]  ;;  %v2753_v20 = vld [vmem:[%s3607_s4 + $0x54] ss:$8 sps:$4 sm:$0xff]   ;;  %v2751_v21 = vld [vmem:[%s3607_s4 + $0x50] ss:$8 sps:$4 sm:$0xff]  }
 0x1fe   : > { %2536 = vmatpush1.bf16.msra.mxu1 %v2720_v57  ;;  %1034 = vmatpush1.bf16.msra.mxu0 %v2720_v57  ;;  %v2748_v18 = vld [vmem:[%s3607_s4 + $0x40] ss:$8 sps:$4 sm:$0xff]   ;;  %v2756_v22 = vld [vmem:[%s3607_s4 + $0x64] ss:$8 sps:$4 sm:$0xff]   ;;  %v932_v23 = vld [vmem:[#allocation3 + $0x38] sm:$0xff] }
 0x1ff   : > { %2529 = vmatprep.subr.bf16.mxu1 %v2721_v58  ;;  %1035 = vmatprep.subr.bf16.mxu0 %v2721_v58  ;;  %v2754_v24 = vld [vmem:[%s3607_s4 + $0x60] ss:$8 sps:$4 sm:$0xff]   ;;  %v928_v25 = vld [vmem:[#allocation3 + $0x18] sm:$0xff]  ;;  %v1144_v30 = vld [vmem:[#allocation4 + $0x10] sm:$0xff] }
 0x200   : > { %v2759_v26 = vld [vmem:[%s3607_s4 + $0x74] ss:$8 sps:$4 sm:$0xff]   ;;  %v2757_v27 = vld [vmem:[%s3607_s4 + $0x70] ss:$8 sps:$4 sm:$0xff]   ;;  %v1142_v28 = vld [vmem:[#allocation4] sm:$0xff] }
 0x201   : > { %v1143_v29 = vld [vmem:[#allocation4 + $0x8] sm:$0xff]  ;;  %v1145_v32 = vld [vmem:[#allocation4 + $0x18] sm:$0xff]  ;;  %v1146_v33 = vld [vmem:[#allocation4 + $0x20] sm:$0xff] }
 0x202   : > { %2537 = vmatpush1.bf16.msra.mxu1 %v2723_v59  ;;  %1036 = vmatpush1.bf16.msra.mxu0 %v2723_v59  ;;  %v1147_v35 = vld [vmem:[#allocation4 + $0x28] sm:$0xff]  ;;  %v1148_v36 = vld [vmem:[#allocation4 + $0x30] sm:$0xff]  ;;  %v1149_v37 = vld [vmem:[#allocation4 + $0x38] sm:$0xff] }
 0x203   : > { %2530 = vmatprep.subr.bf16.mxu1 %v2724_v60  ;;  %1037 = vmatprep.subr.bf16.mxu0 %v2724_v60  ;;  %v2760_v38 = vld [vmem:[%s3609_s14 + $0x40] sm:$0xff]   ;;  %v2762_v40 = vld [vmem:[%s3609_s14 + $0x48] sm:$0xff]   ;;  %v2764_v42 = vld [vmem:[%s3609_s14 + $0x50] sm:$0xff]  }
 0x204   : > { %v2761_v39 = vld [vmem:[%s3609_s14] sm:$0xff]   ;;  %v2763_v41 = vld [vmem:[%s3609_s14 + $0x8] sm:$0xff]   ;;  %v2765_v43 = vld [vmem:[%s3609_s14 + $0x10] sm:$0xff]  }
 0x205   : > { %v2766_v44 = vld [vmem:[%s3609_s14 + $0x58] sm:$0xff]   ;;  %v2768_v46 = vld [vmem:[%s3609_s14 + $0x60] sm:$0xff]   ;;  %v2770_v48 = vld [vmem:[%s3609_s14 + $0x68] sm:$0xff]  }
 0x206   : > { %2538 = vmatpush1.bf16.msra.mxu1 %v2726_v61  ;;  %1038 = vmatpush1.bf16.msra.mxu0 %v2726_v61  ;;  %v2767_v45 = vld [vmem:[%s3609_s14 + $0x18] sm:$0xff]   ;;  %v2769_v47 = vld [vmem:[%s3609_s14 + $0x20] sm:$0xff]   ;;  %v2771_v49 = vld [vmem:[%s3609_s14 + $0x28] sm:$0xff]  }
 0x207   : > { %2531 = vmatprep.subr.bf16.mxu1 %v2727_v62  ;;  %1039 = vmatprep.subr.bf16.mxu0 %v2727_v62  ;;  %v2772_v31 = vld [vmem:[%s3609_s14 + $0x70] sm:$0xff]   ;;  %v2774_v51 = vld [vmem:[%s3609_s14 + $0x78] sm:$0xff]  }
 0x208   : > { %v2773_v50 = vld [vmem:[%s3609_s14 + $0x30] sm:$0xff]   ;;  %v2775_v34 = vld [vmem:[%s3609_s14 + $0x38] sm:$0xff]  }
 0x20a   : > { %2539 = vmatpush1.bf16.msra.mxu1 %v2729_v63  ;;  %1040 = vmatpush1.bf16.msra.mxu0 %v2729_v63 }
 0x20b   : > { %2532 = vmatprep.subr.bf16.mxu1 %v2730_v0  ;;  %1041 = vmatprep.subr.bf16.mxu0 %v2730_v0 }
 0x20e   : > { %2540 = vmatpush1.bf16.msra.mxu1 %v2732_v1  ;;  %1042 = vmatpush1.bf16.msra.mxu0 %v2732_v1 }
 0x20f   : > { %2533 = vmatprep.subr.bf16.mxu1 %v2733_v2  ;;  %1043 = vmatprep.subr.bf16.mxu0 %v2733_v2 }
 0x212   : > { %2541 = vmatpush1.bf16.msra.mxu1 %v2735_v3  ;;  %1044 = vmatpush1.bf16.msra.mxu0 %v2735_v3 }
 0x213   : > { %1246 = vmatprep.subr.bf16.mxu1 %v2738_v4  ;;  %2446 = vmatprep.subr.bf16.mxu0 %v2760_v38 }
 0x215   : > { %1102 = vmatmul.mubr.bf16.vlgmr.msra.gmra.mrb[0].mxu1 %v929_v5  ;;  %1062 = vmatmul.mubr.bf16.vlgmr.msra.gmra.mrb[0].mxu0 %v925_v7 }
 0x216   : > { %1247 = vmatpush1.bf16.msra.mxu1 %v2736_v6  ;;  %1111 = vmatprep.mubr.bf16.mxu1 %v3196_v53 }
 0x217   : > { %1248 = vmatprep.subr.bf16.mxu1 %v2741_v8  ;;  %1071 = vmatprep.mubr.bf16.mxu0 %v3196_v53 }
 0x218   : > { %2447 = vmatpush3.bf16.msra.mxu0 %v2761_v39 }
 0x219   : > { %2448 = vmatprep.subr.bf16.mxu0 %v2762_v40 }
 0x21a   : > { %1249 = vmatpush1.bf16.msra.mxu1 %v2739_v9 }
 0x21b   : > { %1250 = vmatprep.subr.bf16.mxu1 %v2744_v10 }
 0x21c   : > { %2449 = vmatpush3.bf16.msra.mxu0 %v2763_v41 }
 0x21d   : > { %1112 = vmatmul.mubr.bf16.gmra.mrb[4].mxu1 %v930_v11  ;;  %1072 = vmatmul.mubr.bf16.gmra.mrb[4].mxu0 %v926_v13 }
 0x21e   : > { %1251 = vmatpush1.bf16.msra.mxu1 %v2742_v12  ;;  %1121 = vmatprep.mubr.bf16.mxu1 %v3196_v53 }
 0x21f   : > { %1252 = vmatprep.subr.bf16.mxu1 %v2747_v14  ;;  %1081 = vmatprep.mubr.bf16.mxu0 %v3196_v53 }
 0x220   : > { %2450 = vmatprep.subr.bf16.mxu0 %v2764_v42 }
 0x221   : > { %2451 = vmatpush3.bf16.msra.mxu0 %v2765_v43 }
 0x222   : > { %1253 = vmatpush1.bf16.msra.mxu1 %v2745_v15  ;;  %2452 = vmatprep.subr.bf16.mxu0 %v2766_v44 }
 0x223   : > { %1254 = vmatprep.subr.bf16.mxu1 %v2750_v16 }
 0x225   : > { %1122 = vmatmul.mubr.bf16.gmra.mrb[8].mxu1 %v931_v17  ;;  %1082 = vmatmul.mubr.bf16.gmra.mrb[8].mxu0 %v927_v19 }
 0x226   : > { %1255 = vmatpush1.bf16.msra.mxu1 %v2748_v18  ;;  %1131 = vmatprep.mubr.bf16.mxu1 %v3196_v53 }
 0x227   : > { %1256 = vmatprep.subr.bf16.mxu1 %v2753_v20  ;;  %1091 = vmatprep.mubr.bf16.mxu0 %v3196_v53 }
 0x228   : > { %2453 = vmatpush3.bf16.msra.mxu0 %v2767_v45 }
 0x229   : > { %2454 = vmatprep.subr.bf16.mxu0 %v2768_v46 }
 0x22a   : > { %1257 = vmatpush1.bf16.msra.mxu1 %v2751_v21 }
 0x22b   : > { %1258 = vmatprep.subr.bf16.mxu1 %v2756_v22 }
 0x22c   : > { %2455 = vmatpush3.bf16.msra.mxu0 %v2769_v47 }
 0x22d   : > { %1132 = vmatmul.mubr.bf16.gmra.mrb[12].mxu1 %v932_v23  ;;  %1092 = vmatmul.mubr.bf16.gmra.mrb[12].mxu0 %v928_v25 }
 0x22e   : > { %1259 = vmatpush1.bf16.msra.mxu1 %v2754_v24  ;;  %1278 = vmatprep.mubr.bf16.mxu1 %v3196_v53 }
 0x22f   : > { %1260 = vmatprep.subr.bf16.mxu1 %v2759_v26  ;;  %2456 = vmatprep.subr.bf16.mxu0 %v2770_v48 }
 0x230   : > { %2457 = vmatpush3.bf16.msra.mxu0 %v2771_v49  ;;  %v1649_v49 = vlaneseq }
 0x231   : > { %2458 = vmatprep.subr.bf16.mxu0 %v2772_v31 }
 0x232   : > { %1261 = vmatpush1.bf16.msra.mxu1 %v2757_v27 }
 0x234   : > { %2459 = vmatpush3.bf16.msra.mxu0 %v2773_v50 }
 0x235   : > { %1279 = vmatmul.mubr.bf16.vlgmr.msra.gmra.mrb[16].mxu1 %v1142_v28  ;;  %2460 = vmatprep.subr.bf16.mxu0 %v2774_v51 }
 0x236   : > { %1288 = vmatprep.mubr.bf16.mxu1 %v3196_v53 }
 0x238   : > { %2461 = vmatpush3.bf16.msra.mxu0 %v2775_v34 }
 0x23d   : > { %1289 = vmatmul.mubr.bf16.gmra.mrb[20].mxu1 %v1143_v29 }
 0x23e   : > { %1298 = vmatprep.mubr.bf16.mxu1 %v3196_v53 }
 0x245   : > { %1299 = vmatmul.mubr.bf16.gmra.mrb[24].mxu1 %v1144_v30 }
 0x246   : > { %1308 = vmatprep.mubr.bf16.mxu1 %v3196_v53 }
 0x24d   : > { %1309 = vmatmul.mubr.bf16.gmra.mrb[28].mxu1 %v1145_v32 }
 0x24e   : > { %1318 = vmatprep.mubr.bf16.mxu1 %v3196_v53 }
 0x255   : > { %1319 = vmatmul.mubr.bf16.gmra.mrb[32].mxu1 %v1146_v33 }
 0x256   : > { %1328 = vmatprep.mubr.bf16.mxu1 %v3196_v53 }
 0x25d   : > { %1329 = vmatmul.mubr.bf16.gmra.mrb[36].mxu1 %v1147_v35 }
 0x25e   : > { %1338 = vmatprep.mubr.bf16.mxu1 %v3196_v53 }
 0x265   : > { %1339 = vmatmul.mubr.bf16.gmra.mrb[40].mxu1 %v1148_v36 }
 0x266   : > { %1348 = vmatprep.mubr.bf16.mxu1 %v3196_v53 }
 0x26d   : > { %1349 = vmatmul.mubr.bf16.gmra.mrb[44].mxu1 %v1149_v37 }
 0x2e8   : > { %v3733_v52 = vpop.f32.mrb[0].mxu1  ;;  %v3735_v53 = vpop.f32.mrb[0].mxu0 }
 0x2e9   : > { %v3737_v54 = vpop.f32.mrb[1].mxu1  ;;  %v3739_v55 = vpop.f32.mrb[1].mxu0 }
 0x2ea   : > { %v3741_v56 = vpop.f32.mrb[2].mxu1  ;;  %v3743_v57 = vpop.f32.mrb[2].mxu0 }
 0x2eb   : > { %v3745_v58 = vpop.f32.mrb[3].mxu1  ;;  %v3747_v59 = vpop.f32.mrb[3].mxu0 }
 0x2f0   : > { %v3749_v60 = vpop.f32.mrb[4].mxu1  ;;  %v3751_v61 = vpop.f32.mrb[4].mxu0 }
 0x2f1   : > { %v3753_v62 = vpop.f32.mrb[5].mxu1  ;;  %v3755_v63 = vpop.f32.mrb[5].mxu0 }
 0x2f2   : > { %v3757_v0 = vpop.f32.mrb[6].mxu1  ;;  %v3759_v1 = vpop.f32.mrb[6].mxu0 }
 0x2f3   : > { %v3761_v2 = vpop.f32.mrb[7].mxu1  ;;  %v3763_v3 = vpop.f32.mrb[7].mxu0 }
 0x2f8   : > { %v3765_v4 = vpop.f32.mrb[8].mxu1  ;;  %v3767_v5 = vpop.f32.mrb[8].mxu0 }
 0x2f9   : > { %v3769_v6 = vpop.f32.mrb[9].mxu1  ;;  %v3771_v7 = vpop.f32.mrb[9].mxu0 }
 0x2fa   : > { %v3773_v8 = vpop.f32.mrb[10].mxu1  ;;  %v3775_v9 = vpop.f32.mrb[10].mxu0 }
 0x2fb   : > { %4313 = vst [vmem:[#allocation25_spill] sm:$0xff] %v3773_v8  ;;  %v3777_v10 = vpop.f32.mrb[11].mxu1  ;;  %v3779_v11 = vpop.f32.mrb[11].mxu0 }
 0x2fc   : > { %4314 = vst [vmem:[#allocation26_spill] sm:$0xff] %v3777_v10 }
 0x300   : > { %v3781_v12 = vpop.f32.mrb[12].mxu1  ;;  %v3783_v13 = vpop.f32.mrb[12].mxu0 }
 0x301   : > { %4315 = vst [vmem:[#allocation27_spill] sm:$0xff] %v3781_v12  ;;  %v3785_v14 = vpop.f32.mrb[13].mxu1  ;;  %v3787_v15 = vpop.f32.mrb[13].mxu0 }
 0x302   : > { %4316 = vst [vmem:[#allocation28_spill] sm:$0xff] %v3785_v14  ;;  %v3789_v16 = vpop.f32.mrb[14].mxu1  ;;  %v3791_v17 = vpop.f32.mrb[14].mxu0 }
 0x303   : > { %4317 = vst [vmem:[#allocation29_spill] sm:$0xff] %v3789_v16  ;;  %v3793_v18 = vpop.f32.mrb[15].mxu1  ;;  %v3795_v19 = vpop.f32.mrb[15].mxu0 }
 0x304   : > { %4318 = vst [vmem:[#allocation30_spill] sm:$0xff] %v3793_v18 }
 0x308   : > { %v3797_v20 = vpop.f32.mrb[16].mxu1 }
 0x309   : > { %v2339_v21 = vmul.f32 -1.442695, %v3797_v20  ;;  %v3800_v22 = vpop.f32.mrb[17].mxu1 }
 0x30a   : > { %v2340_v23 = vmul.f32 -1.442695, %v3800_v22  ;;  %v3803_v24 = vpop.f32.mrb[18].mxu1 }
 0x30b   : > { %2776 = vpow2.f32 %v2339_v21  ;;  %v2341_v25 = vmul.f32 -1.442695, %v3803_v24  ;;  %v3806_v26 = vpop.f32.mrb[19].mxu1 }
 0x30c   : > { %2778 = vpow2.f32 %v2340_v23  ;;  %v2342_v27 = vmul.f32 -1.442695, %v3806_v26 }
 0x30d   : > { %2780 = vpow2.f32 %v2341_v25  ;;  %v1650_v25 = vshrl.u32 %v1649_v49, 7 }
 0x30e   : > { %2782 = vpow2.f32 %v2342_v27 }
 0x310   : > { %v3809_v28 = vpop.f32.mrb[20].mxu1 }
 0x311   : > { %v2343_v29 = vmul.f32 -1.442695, %v3809_v28  ;;  %v3812_v30 = vpop.f32.mrb[21].mxu1 }
 0x312   : > { %v2344_v32 = vmul.f32 -1.442695, %v3812_v30  ;;  %v3815_v33 = vpop.f32.mrb[22].mxu1 }
 0x313   : > { %2784 = vpow2.f32 %v2343_v29  ;;  %v2345_v35 = vmul.f32 -1.442695, %v3815_v33  ;;  %v3818_v36 = vpop.f32.mrb[23].mxu1 }
 0x314   : > { %2786 = vpow2.f32 %v2344_v32  ;;  %v2346_v37 = vmul.f32 -1.442695, %v3818_v36 }
 0x315   : > { %v2777_v38 = vpop.eup %2776  ;;  %2788 = vpow2.f32 %v2345_v35 }
 0x316   : > { %v2779_v39 = vpop.eup %2778  ;;  %v1455_v40 = vadd.f32 1.0, %v2777_v38  ;;  %2790 = vpow2.f32 %v2346_v37 }
 0x317   : > { %v2781_v41 = vpop.eup %2780  ;;  %v1456_v42 = vadd.f32 1.0, %v2779_v39 }
 0x318   : > { %v2783_v43 = vpop.eup %2782  ;;  %2792 = vrcp.f32 %v1455_v40  ;;  %v1457_v44 = vadd.f32 1.0, %v2781_v41  ;;  %v3821_v45 = vpop.f32.mrb[24].mxu1 }
 0x319   : > { %2794 = vrcp.f32 %v1456_v42  ;;  %v1458_v46 = vadd.f32 1.0, %v2783_v43  ;;  %v2347_v47 = vmul.f32 -1.442695, %v3821_v45  ;;  %v3824_v48 = vpop.f32.mrb[25].mxu1  ;;  %v1651_v43 = vsub.s32 0, %v1650_v25 }
 0x31a   : > { %2796 = vrcp.f32 %v1457_v44  ;;  %v2348_v31 = vmul.f32 -1.442695, %v3824_v48  ;;  %v3827_v50 = vpop.f32.mrb[26].mxu1 }
 0x31b   : > { %2798 = vrcp.f32 %v1458_v46  ;;  %v2349_v51 = vmul.f32 -1.442695, %v3827_v50  ;;  %v3830_v34 = vpop.f32.mrb[27].mxu1 }
 0x31c   : > { %2800 = vpow2.f32 %v2347_v47  ;;  %v2350_v21 = vmul.f32 -1.442695, %v3830_v34  ;;  %v1647_v47 = vld [vmem:[%s455_s21] sm:$0x3] }
 0x31d   : > { %v2785_v23 = vpop.eup %2784  ;;  %2802 = vpow2.f32 %v2348_v31  ;;  %v1655_v31 = vsub.s32 1, %v1650_v25  ;;  %v3856_v18 = vrot.slane %v1647_v47, %v1651_v43 }
 0x31e   : > { %v2787_v27 = vpop.eup %2786  ;;  %v1459_v29 = vadd.f32 1.0, %v2785_v23  ;;  %2804 = vpow2.f32 %v2349_v51 }
 0x31f   : > { %v2789_v32 = vpop.eup %2788  ;;  %v1460_v35 = vadd.f32 1.0, %v2787_v27  ;;  %2806 = vpow2.f32 %v2350_v21 }
 0x320   : > { %v2791_v37 = vpop.eup %2790  ;;  %2808 = vrcp.f32 %v1459_v29  ;;  %v1461_v38 = vadd.f32 1.0, %v2789_v32  ;;  %v3833_v39 = vpop.f32.mrb[28].mxu1 }
 0x321   : > { %2810 = vrcp.f32 %v1460_v35  ;;  %v1462_v40 = vadd.f32 1.0, %v2791_v37  ;;  %v2351_v41 = vmul.f32 -1.442695, %v3833_v39  ;;  %v3836_v42 = vpop.f32.mrb[29].mxu1 }
 0x322   : > { %v2793_v44 = vpop.eup %2792  ;;  %2812 = vrcp.f32 %v1461_v38  ;;  %v2352_v46 = vmul.f32 -1.442695, %v3836_v42  ;;  %v3844_v49 = vpop.f32.mrb[30].mxu1 }
 0x323   : > { %v2795_v51 = vpop.eup %2794  ;;  %v1551_v21 = vmul.f32 %v2793_v44, %v3797_v20  ;;  %2814 = vrcp.f32 %v1462_v40  ;;  %v2353_v23 = vmul.f32 -1.442695, %v3844_v49  ;;  %v3848_v27 = vpop.f32.mrb[31].mxu1 }
 0x324   : > { %v2797_v29 = vpop.eup %2796  ;;  %v1552_v32 = vmul.f32 %v2795_v51, %v3800_v22  ;;  %2816 = vpow2.f32 %v2351_v41  ;;  %v2354_v35 = vmul.f32 -1.442695, %v3848_v27  ;;  %v3862_v22 = vrot.slane %v1647_v47, %v1655_v31 }
 0x325   : > { %v2799_v37 = vpop.eup %2798  ;;  %v1553_v38 = vmul.f32 %v2797_v29, %v3803_v24  ;;  %2818 = vpow2.f32 %v2352_v46  ;;  %v3854_v25 = vmul.f32 %v1551_v21, %v3735_v53 }
 0x326   : > { %v2801_v20 = vpop.eup %2800  ;;  %v1554_v40 = vmul.f32 %v2799_v37, %v3806_v26  ;;  %2820 = vpow2.f32 %v2353_v23  ;;  %v3860_v44 = vmul.f32 %v1552_v32, %v3739_v55 }
 0x327   : > { %v2803_v41 = vpop.eup %2802  ;;  %v1463_v51 = vadd.f32 1.0, %v2801_v20  ;;  %v1615_v16 = vand.u32 2147483647, %v3854_v25  ;;  %2822 = vpow2.f32 %v2354_v35  ;;  %v3866_v24 = vmul.f32 %v1553_v38, %v3743_v57 }
 0x328   : > { %v2805_v53 = vpop.eup %2804  ;;  %v1464_v43 = vadd.f32 1.0, %v2803_v41  ;;  %v1616_v46 = vand.u32 2147483647, %v3860_v44  ;;  %v3870_v26 = vmul.f32 %v1554_v40, %v3747_v59  ;;  %v3872_v21 = vpop.f32.mrb[32].mxu1 }
 0x329   : > { %v2807_v55 = vpop.eup %2806  ;;  %2824 = vrcp.f32 %v1463_v51  ;;  %v1465_v47 = vadd.f32 1.0, %v2805_v53  ;;  %v1659_v31 = vmul.f32 %v3856_v18, %v1615_v16  ;;  %v1617_v23 = vand.u32 2147483647, %v3866_v24  ;;  %v3876_v29 = vpop.f32.mrb[33].mxu1 }
 0x32a   : > { %v2809_v57 = vpop.eup %2808  ;;  %2826 = vrcp.f32 %v1464_v43  ;;  %v1466_v32 = vadd.f32 1.0, %v2807_v55  ;;  %v3879_v35 = vmul.f32 %v3862_v22, %v1616_v46  ;;  %v3883_v37 = vpop.f32.mrb[34].mxu1  ;;  %v1618_v53 = vand.u32 2147483647, %v3870_v26 }
 0x32b   : > { %v2811_v38 = vpop.eup %2810  ;;  %v1555_v20 = vmul.f32 %v2809_v57, %v3809_v28  ;;  %2828 = vrcp.f32 %v1465_v47  ;;  %vm1691_vm0 = vcmp.le.f32.partialorder %v1659_v31, 1.0  ;;  %v1661_v16 = vmul.f32 %v3856_v18, %v1617_v23  ;;  %v3887_v40 = vpop.f32.mrb[35].mxu1 }
 0x32c   : > { %v2813_v41 = vpop.eup %2812  ;;  %v1556_v51 = vmul.f32 %v2811_v38, %v3812_v30  ;;  %2830 = vrcp.f32 %v1466_v32  ;;  %v2388_v43 = vpack.c.bf16 %v3870_v26, %v3860_v44  ;;  %v2355_v28 = vmul.f32 -1.442695, %v3872_v21 }
 0x32d   : > { %v2815_v46 = vpop.eup %2814  ;;  %v1557_v55 = vmul.f32 %v2813_v41, %v3815_v33  ;;  %vm1693_vm1 = vcmp.le.f32.partialorder %v1661_v16, 1.0  ;;  %v2356_v47 = vmul.f32 -1.442695, %v3876_v29  ;;  %v1662_v32 = vmul.f32 %v3862_v22, %v1618_v53 }
 0x32e   : > { %v2817_v23 = vpop.eup %2816  ;;  %v1558_v57 = vmul.f32 %v2815_v46, %v3818_v36  ;;  %vm3898_vm2 = vmpackc.low %vm1693_vm1, %vm1691_vm0  ;;  %v3904_v44 = vmul.f32 %v1555_v20, %v3751_v61  ;;  %v2357_v33 = vmul.f32 -1.442695, %v3883_v37  ;;  %2832 = vpow2.f32 %v2355_v28 }
 0x32f   : > { %v2819_v26 = vpop.eup %2818  ;;  %v1467_v38 = vadd.f32 1.0, %v2817_v23  ;;  %v3908_v16 = vmul.f32 %v1556_v51, %v3755_v63  ;;  %v2358_v36 = vmul.f32 -1.442695, %v3887_v40  ;;  %2834 = vpow2.f32 %v2356_v47 }
 0x330   : > { %v2821_v31 = vpop.eup %2820  ;;  %v1468_v41 = vadd.f32 1.0, %v2819_v26  ;;  %v1619_v46 = vand.u32 2147483647, %v3904_v44  ;;  %v3913_v53 = vmul.f32 %v1557_v55, %v3759_v1  ;;  %v3915_v61 = vpop.f32.mrb[36].mxu1  ;;  %v3919_v63 = vmul.f32 %v1558_v57, %v3763_v3 }
 0x331   : > { %v2823_v20 = vpop.eup %2822  ;;  %2836 = vrcp.f32 %v1467_v38  ;;  %v1469_v59 = vadd.f32 1.0, %v2821_v31  ;;  %v1620_v28 = vand.u32 2147483647, %v3908_v16  ;;  %v3921_v51 = vpop.f32.mrb[37].mxu1  ;;  %v2359_v12 = vmul.f32 -1.442695, %v3915_v61 }
 0x332   : > { %2838 = vrcp.f32 %v1468_v41  ;;  %v1470_v23 = vadd.f32 1.0, %v2823_v20  ;;  %v3924_v47 = vmul.f32 %v3856_v18, %v1619_v46  ;;  %v1621_v1 = vand.u32 2147483647, %v3913_v53  ;;  %v3927_v55 = vpop.f32.mrb[38].mxu1 }
 0x333   : > { %v2825_v26 = vpop.eup %2824  ;;  %2840 = vrcp.f32 %v1469_v59  ;;  %v3930_v38 = vmul.f32 %v3862_v22, %v1620_v28  ;;  %v1622_v57 = vand.u32 2147483647, %v3919_v63  ;;  %v3935_v31 = vpop.f32.mrb[39].mxu1  ;;  %v2394_v59 = vpack.c.bf16 %v3919_v63, %v3908_v16 }
 0x334   : > { %v2827_v41 = vpop.eup %2826  ;;  %v1559_v46 = vmul.f32 %v2825_v26, %v3821_v45  ;;  %2842 = vrcp.f32 %v1470_v23  ;;  %v3939_v20 = vmul.f32 %v3856_v18, %v1621_v1  ;;  %vm1692_vm3 = vcmp.le.f32.partialorder %v3879_v35, 1.0 }
 0x335   : > { %v2829_v14 = vpop.eup %2828  ;;  %v1560_v28 = vmul.f32 %v2827_v41, %v3824_v48  ;;  %2844 = vpow2.f32 %v2357_v33  ;;  %v1666_v3 = vmul.f32 %v3862_v22, %v1622_v57  ;;  %vm1694_vm4 = vcmp.le.f32.partialorder %v1662_v32, 1.0 }
 0x336   : > { %v2831_v10 = vpop.eup %2830  ;;  %v1561_v8 = vmul.f32 %v2829_v14, %v3827_v50  ;;  %2846 = vpow2.f32 %v2358_v36  ;;  %vm2387_vm5 = vmpackc.low %vm1694_vm4, %vm1692_vm3  ;;  %v2360_v23 = vmul.f32 -1.442695, %v3921_v51  ;;  %v3951_v48 = vmul.f32 %v1559_v46, %v3767_v5 }
 0x337   : > { %v1562_v45 = vmul.f32 %v2831_v10, %v3830_v34  ;;  %2848 = vpow2.f32 %v2359_v12  ;;  %2389 = vmatprep.mubr.msk.bf16.mxu0 %vm2387_vm5, %v2388_v43  ;;  %v2361_v33 = vmul.f32 -1.442695, %v3927_v55  ;;  %v3955_v1 = vmul.f32 %v1560_v28, %v3771_v7 }
 0x338   : > { %v2362_v14 = vmul.f32 -1.442695, %v3935_v31  ;;  %v3959_v50 = vmul.f32 %v1561_v8, %v3775_v9  ;;  %v3961_v35 = vpop.f32.mrb[40].mxu1  ;;  %v2833_v10 = vpop.eup %2832  ;;  %2850 = vpow2.f32 %v2360_v23  ;;  %v4321_v12 = vpack.c.bf16 %v3866_v24, %v3854_v25 }
 0x339   : > { %v1623_v5 = vand.u32 2147483647, %v3951_v48  ;;  %v3970_v7 = vmul.f32 %v1562_v45, %v3779_v11  ;;  %v2363_v34 = vmul.f32 -1.442695, %v3961_v35  ;;  %v3973_v43 = vpop.f32.mrb[41].mxu1  ;;  %v2835_v8 = vpop.eup %2834  ;;  %v1471_v9 = vadd.f32 1.0, %v2833_v10 }
 0x33a   : > { %2392 = vmatmul.mubr.msk.bf16.vlgmr.msra.gmra.mrb[16].mxu0 %vm3898_vm2, %v4321_v12  ;;  %2852 = vpow2.f32 %v2361_v33  ;;  %v1624_v32 = vand.u32 2147483647, %v3955_v1  ;;  %v1625_v36 = vand.u32 2147483647, %v3959_v50  ;;  %v3977_v25 = vpop.f32.mrb[42].mxu1  ;;  %v1472_v30 = vadd.f32 1.0, %v2835_v8 }
 0x33b   : > { %v2837_v24 = vpop.eup %2836  ;;  %v3980_v26 = vmul.f32 %v3856_v18, %v1623_v5  ;;  %2854 = vpow2.f32 %v2362_v14  ;;  %v2403_v11 = vpack.c.bf16 %v3959_v50, %v3951_v48  ;;  %v3984_v57 = vpop.f32.mrb[43].mxu1  ;;  %v1626_v14 = vand.u32 2147483647, %v3970_v7 }
 0x33c   : > { %v2839_v41 = vpop.eup %2838  ;;  %v1563_v46 = vmul.f32 %v2837_v24, %v3833_v39  ;;  %2856 = vrcp.f32 %v1471_v9  ;;  %v3988_v28 = vmul.f32 %v3862_v22, %v1624_v32  ;;  %v3991_v45 = vmul.f32 %v3856_v18, %v1625_v36 }
 0x33d   : > { %v2841_v23 = vpop.eup %2840  ;;  %v1564_v33 = vmul.f32 %v2839_v41, %v3836_v42  ;;  %2858 = vrcp.f32 %v1472_v30  ;;  %v2400_v10 = vpack.c.bf16 %v3970_v7, %v3955_v1  ;;  %vm1696_vm6 = vcmp.le.f32.partialorder %v3930_v38, 1.0 }
 0x33e   : > { %v2843_v12 = vpop.eup %2842  ;;  %v1565_v5 = vmul.f32 %v2841_v23, %v3844_v49  ;;  %2860 = vpow2.f32 %v2363_v34  ;;  %vm1698_vm7 = vcmp.le.f32.partialorder %v1666_v3, 1.0  ;;  %v1670_v9 = vmul.f32 %v3862_v22, %v1626_v14 }
 0x33f   : > { %v2845_v39 = vpop.eup %2844  ;;  %v1566_v8 = vmul.f32 %v2843_v12, %v3848_v27  ;;  %vm2393_vm8 = vmpackc.low %vm1698_vm7, %vm1696_vm6  ;;  %v2364_v42 = vmul.f32 -1.442695, %v3973_v43  ;;  %vm1695_vm9 = vcmp.le.f32.partialorder %v3924_v47, 1.0  ;;  %vm1697_vm10 = vcmp.le.f32.partialorder %v3939_v20, 1.0 }
 0x340   : > { %v2847_v32 = vpop.eup %2846  ;;  %v1473_v36 = vadd.f32 1.0, %v2845_v39  ;;  %2395 = vmatprep.mubr.msk.bf16.mxu0 %vm2393_vm8, %v2394_v59  ;;  %v4008_v49 = vmul.f32 %v1563_v46, %v3783_v13  ;;  %v2365_v27 = vmul.f32 -1.442695, %v3977_v25  ;;  %v4011_v38 = vpop.f32.mrb[44].mxu1  ;;  %vm2396_vm11 = vmpackc.low %vm1697_vm10, %vm1695_vm9  ;;  %v4014_v47 = vmul.f32 %v1564_v33, %v3787_v15 }
 0x341   : > { %v2849_v3 = vpop.eup %2848  ;;  %v1474_v34 = vadd.f32 1.0, %v2847_v32  ;;  %2862 = vpow2.f32 %v2364_v42  ;;  %v2366_v24 = vmul.f32 -1.442695, %v3984_v57  ;;  %v4017_v16 = vpop.f32.mrb[45].mxu1  ;;  %v4322_v13 = vpack.c.bf16 %v3913_v53, %v3904_v44 }
 0x342   : > { %2864 = vrcp.f32 %v1473_v36  ;;  %v1475_v63 = vadd.f32 1.0, %v2849_v3  ;;  %v1627_v20 = vand.u32 2147483647, %v4008_v49  ;;  %v4024_v59 = vmul.f32 %v1565_v5, %v3791_v17  ;;  %v4026_v30 = vpop.f32.mrb[46].mxu1  ;;  %v2851_v41 = vpop.eup %2850 }
 0x343   : > { %2398 = vmatmul.mubr.msk.bf16.gmra.mrb[20].mxu0 %vm2396_vm11, %v4322_v13  ;;  %2866 = vrcp.f32 %v1474_v34  ;;  %v1628_v15 = vand.u32 2147483647, %v4014_v47  ;;  %v4030_v46 = vmul.f32 %v1566_v8, %v3795_v19  ;;  %v2367_v23 = vmul.f32 -1.442695, %v4011_v38  ;;  %v4033_v33 = vpop.f32.mrb[47].mxu1 }
 0x344   : > { %v2853_v44 = vpop.eup %2852  ;;  %2868 = vrcp.f32 %v1475_v63  ;;  %v1476_v53 = vadd.f32 1.0, %v2851_v41  ;;  %v1671_v14 = vmul.f32 %v3856_v18, %v1627_v20  ;;  %v1629_v17 = vand.u32 2147483647, %v4024_v59 }
 0x345   : > { %v2855_v12 = vpop.eup %2854  ;;  %v1477_v5 = vadd.f32 1.0, %v2853_v44  ;;  %2870 = vpow2.f32 %v2365_v27  ;;  %v1672_v39 = vmul.f32 %v3862_v22, %v1628_v15  ;;  %v2409_v19 = vpack.c.bf16 %v4024_v59, %v4008_v49 }
 0x346   : > { %v2857_v8 = vpop.eup %2856  ;;  %2872 = vrcp.f32 %v1476_v53  ;;  %v1478_v42 = vadd.f32 1.0, %v2855_v12  ;;  %v1673_v32 = vmul.f32 %v3856_v18, %v1629_v17  ;;  %v1630_v36 = vand.u32 2147483647, %v4030_v46 }
 0x347   : > { %v2859_v3 = vpop.eup %2858  ;;  %v1567_v34 = vmul.f32 %v2857_v8, %v3872_v21  ;;  %2874 = vrcp.f32 %v1477_v5  ;;  %v2406_v63 = vpack.c.bf16 %v4030_v46, %v4014_v47  ;;  %vm1700_vm12 = vcmp.le.f32.partialorder %v3988_v28, 1.0 }
 0x348   : > { %v2861_v27 = vpop.eup %2860  ;;  %v1568_v13 = vmul.f32 %v2859_v3, %v3876_v29  ;;  %2876 = vrcp.f32 %v1478_v42  ;;  %v1674_v20 = vmul.f32 %v3862_v22, %v1630_v36  ;;  %vm1702_vm13 = vcmp.le.f32.partialorder %v1670_v9, 1.0 }
 0x349   : > { %v4049_v41 = vmul.f32 %v1567_v34, %v3733_v52  ;;  %v1479_v15 = vadd.f32 1.0, %v2861_v27  ;;  %2878 = vpow2.f32 %v2366_v24  ;;  %vm2399_vm14 = vmpackc.low %vm1702_vm13, %vm1700_vm12  ;;  %v2368_v21 = vmul.f32 -1.442695, %v4017_v16 }
 0x34a   : > { %v4053_v44 = vmul.f32 %v1568_v13, %v3737_v54  ;;  %2880 = vpow2.f32 %v2367_v23  ;;  %2401 = vmatprep.mubr.msk.bf16.mxu0 %vm2399_vm14, %v2400_v10  ;;  %vm1699_vm15 = vcmp.le.f32.partialorder %v3980_v26, 1.0  ;;  %vm1701_vm0 = vcmp.le.f32.partialorder %v3991_v45, 1.0 }
 0x34b   : > { %v2863_v29 = vpop.eup %2862  ;;  %v1631_v52 = vand.u32 2147483647, %v4049_v41  ;;  %2882 = vrcp.f32 %v1479_v15  ;;  %vm2402_vm1 = vmpackc.low %vm1701_vm0, %vm1699_vm15  ;;  %v2369_v28 = vmul.f32 -1.442695, %v4026_v30  ;;  %v2370_v9 = vmul.f32 -1.442695, %v4033_v33 }
 0x34c   : > { %v2865_v54 = vpop.eup %2864  ;;  %v1632_v47 = vand.u32 2147483647, %v4053_v44  ;;  %v1480_v24 = vadd.f32 1.0, %v2863_v29  ;;  %2884 = vpow2.f32 %v2368_v21  ;;  %2404 = vmatmul.mubr.msk.bf16.gmra.mrb[24].mxu0 %vm2402_vm1, %v2403_v11  ;;  %vm1704_vm2 = vcmp.le.f32.partialorder %v1672_v39, 1.0 }
 0x34d   : > { %v2867_v1 = vpop.eup %2866  ;;  %v1569_v7 = vmul.f32 %v2865_v54, %v3883_v37  ;;  %2886 = vpow2.f32 %v2369_v28  ;;  %vm1706_vm3 = vcmp.le.f32.partialorder %v1674_v20, 1.0  ;;  %vm1703_vm4 = vcmp.le.f32.partialorder %v1671_v14, 1.0 }
 0x34e   : > { %v2869_v26 = vpop.eup %2868  ;;  %v1570_v45 = vmul.f32 %v2867_v1, %v3887_v40  ;;  %2888 = vrcp.f32 %v1480_v24  ;;  %vm2405_vm5 = vmpackc.low %vm1706_vm3, %vm1704_vm2  ;;  %vm1705_vm6 = vcmp.le.f32.partialorder %v1673_v32, 1.0  ;;  %v1676_v10 = vmul.f32 %v3862_v22, %v1632_v47 }
 0x34f   : > { %v2871_v46 = vpop.eup %2870  ;;  %v4071_v23 = vmul.f32 %v1569_v7, %v3741_v56  ;;  %v1571_v48 = vmul.f32 %v2869_v26, %v3915_v61  ;;  %2890 = vpow2.f32 %v2370_v9  ;;  %2407 = vmatprep.mubr.msk.bf16.mxu0 %vm2405_vm5, %v2406_v63  ;;  %vm4074_vm7 = vmpackc.low %vm1705_vm6, %vm1703_vm4  ;;  %v1675_v53 = vmul.f32 %v3856_v18, %v1631_v52 }
 0x350   : > { %v2873_v50 = vpop.eup %2872  ;;  %v1602_v40 = vmul.f32 %v1570_v45, %v3745_v58  ;;  %v1481_v11 = vadd.f32 1.0, %v2871_v46  ;;  %vm1708_vm8 = vcmp.le.f32.partialorder %v1676_v10, 1.0  ;;  %v1775_v45 = vld [vmem:[#allocation2 + $0x20] sm:$0xff] }
 0x351   : > { %v2875_v14 = vpop.eup %2874  ;;  %v1633_v17 = vand.u32 2147483647, %v4071_v23  ;;  %v2415_v56 = vpack.c.bf16 %v4071_v23, %v4049_v41  ;;  %v4084_v61 = vmul.f32 %v1571_v48, %v3749_v60  ;;  %v1572_v12 = vmul.f32 %v2873_v50, %v3921_v51 }
 0x352   : > { %v2877_v5 = vpop.eup %2876  ;;  %v1634_v39 = vand.u32 2147483647, %v1602_v40  ;;  %v2412_v8 = vpack.c.bf16 %v1602_v40, %v4053_v44  ;;  %v1573_v58 = vmul.f32 %v2875_v14, %v3927_v55  ;;  %2892 = vrcp.f32 %v1481_v11  ;;  %v4330_v14 = vld [vmem:[#allocation26_spill] sm:$0xff] }
 0x353   : > { %v2879_v42 = vpop.eup %2878  ;;  %v1635_v32 = vand.u32 2147483647, %v4084_v61  ;;  %v1604_v36 = vmul.f32 %v1572_v12, %v3753_v62  ;;  %v1574_v3 = vmul.f32 %v2877_v5, %v3935_v31  ;;  %v1677_v34 = vmul.f32 %v3856_v18, %v1633_v17  ;;  %v4331_v12 = vld [vmem:[#allocation27_spill] sm:$0xff] }
 0x354   : > { %v2881_v60 = vpop.eup %2880  ;;  %v4094_v63 = vmul.f32 %v1573_v58, %v3757_v0  ;;  %v1482_v51 = vadd.f32 1.0, %v2879_v42  ;;  %2410 = vmatmul.mubr.msk.bf16.gmra.mrb[28].mxu0 %vm4074_vm7, %v2409_v19  ;;  %v1678_v55 = vmul.f32 %v3862_v22, %v1634_v39  ;;  %vm1707_vm9 = vcmp.le.f32.partialorder %v1675_v53, 1.0 }
 0x355   : > { %v2883_v27 = vpop.eup %2882  ;;  %v1636_v62 = vand.u32 2147483647, %v1604_v36  ;;  %v1606_v31 = vmul.f32 %v1574_v3, %v3761_v2  ;;  %v1483_v13 = vadd.f32 1.0, %v2881_v60  ;;  %vm1709_vm10 = vcmp.le.f32.partialorder %v1677_v34, 1.0 }
 0x356   : > { %v2885_v20 = vpop.eup %2884  ;;  %v1637_v0 = vand.u32 2147483647, %v4094_v63  ;;  %v2421_v41 = vpack.c.bf16 %v4094_v63, %v4084_v61  ;;  %v1575_v49 = vmul.f32 %v2883_v27, %v3961_v35  ;;  %2894 = vrcp.f32 %v1482_v51  ;;  %vm4107_vm11 = vmpackc.low %vm1709_vm10, %vm1707_vm9 }
 0x357   : > { %v2887_v19 = vpop.eup %2886  ;;  %v1638_v15 = vand.u32 2147483647, %v1606_v31  ;;  %v2418_v21 = vpack.c.bf16 %v1606_v31, %v1604_v36  ;;  %2896 = vrcp.f32 %v1483_v13  ;;  %v1484_v2 = vadd.f32 1.0, %v2885_v20  ;;  %v4332_v36 = vld [vmem:[#allocation28_spill] sm:$0xff]  ;;  %v4336_v31 = vld [vmem:[#allocation30_spill] sm:$0xff] }
 0x358   : > { %v2889_v44 = vpop.eup %2888  ;;  %v4112_v29 = vmul.f32 %v1575_v49, %v3765_v4  ;;  %v1485_v52 = vadd.f32 1.0, %v2887_v19  ;;  %vm1710_vm12 = vcmp.le.f32.partialorder %v1678_v55, 1.0  ;;  %v1680_v28 = vmul.f32 %v3862_v22, %v1636_v62  ;;  %v1771_v19 = vld [vmem:[#allocation2] sm:$0xff] }
 0x359   : > { %v2891_v9 = vpop.eup %2890  ;;  %v1576_v35 = vmul.f32 %v2889_v44, %v3973_v43  ;;  %2898 = vrcp.f32 %v1484_v2  ;;  %vm2411_vm13 = vmpackc.low %vm1710_vm12, %vm1708_vm8  ;;  %v1682_v54 = vmul.f32 %v3862_v22, %v1638_v15  ;;  %v1679_v47 = vmul.f32 %v3856_v18, %v1635_v32  ;;  %v1772_v44 = vld [vmem:[#allocation2 + $0x8] sm:$0xff] }
 0x35a   : > { %2900 = vrcp.f32 %v1485_v52  ;;  %v1486_v24 = vadd.f32 1.0, %v2891_v9  ;;  %2413 = vmatprep.mubr.msk.bf16.mxu0 %vm2411_vm13, %v2412_v8  ;;  %vm1712_vm14 = vcmp.le.f32.partialorder %v1680_v28, 1.0  ;;  %v1681_v1 = vmul.f32 %v3856_v18, %v1637_v0  ;;  %v1773_v9 = vld [vmem:[#allocation2 + $0x10] sm:$0xff] }
 0x35b   : > { %v1608_v4 = vmul.f32 %v1576_v35, %v3769_v6  ;;  %vm1714_vm15 = vcmp.le.f32.partialorder %v1682_v54, 1.0  ;;  %v1639_v26 = vand.u32 2147483647, %v4112_v29  ;;  %vm1711_vm1 = vcmp.le.f32.partialorder %v1679_v47, 1.0  ;;  %v4329_v6 = vld [vmem:[#allocation25_spill] sm:$0xff] }
 0x35c   : > { %v2893_v7 = vpop.eup %2892  ;;  %2902 = vrcp.f32 %v1486_v24  ;;  %2416 = vmatmul.mubr.msk.bf16.gmra.mrb[32].mxu0 %vm4107_vm11, %v2415_v56  ;;  %vm2417_vm0 = vmpackc.low %vm1714_vm15, %vm1712_vm14  ;;  %vm1713_vm2 = vcmp.le.f32.partialorder %v1681_v1, 1.0  ;;  %v1774_v24 = vld [vmem:[#allocation2 + $0x18] sm:$0xff] }
 0x35d   : > { %v1577_v43 = vmul.f32 %v2893_v7, %v3977_v25  ;;  %2419 = vmatprep.mubr.msk.bf16.mxu0 %vm2417_vm0, %v2418_v21  ;;  %vm4125_vm3 = vmpackc.low %vm1713_vm2, %vm1711_vm1  ;;  %v1640_v23 = vand.u32 2147483647, %v1608_v4  ;;  %v1683_v48 = vmul.f32 %v3856_v18, %v1639_v26 }
 0x35f   : > { %v1609_v10 = vmul.f32 %v1577_v43, %v4329_v6  ;;  %v1684_v8 = vmul.f32 %v3862_v22, %v1640_v23  ;;  %vm1715_vm4 = vcmp.le.f32.partialorder %v1683_v48, 1.0  ;;  %v1776_v23 = vld [vmem:[#allocation2 + $0x28] sm:$0xff] }
 0x360   : > { %v2895_v46 = vpop.eup %2894 }
 0x361   : > { %v2897_v37 = vpop.eup %2896  ;;  %v1641_v50 = vand.u32 2147483647, %v1609_v10  ;;  %v2427_v40 = vpack.c.bf16 %v1609_v10, %v4112_v29  ;;  %v1578_v11 = vmul.f32 %v2895_v46, %v3984_v57  ;;  %vm1716_vm7 = vcmp.le.f32.partialorder %v1684_v8, 1.0 }
 0x362   : > { %v1579_v25 = vmul.f32 %v2897_v37, %v4011_v38 }
 0x363   : > { %v2899_v53 = vpop.eup %2898  ;;  %v1610_v17 = vmul.f32 %v1578_v11, %v4330_v14  ;;  %v1685_v56 = vmul.f32 %v3856_v18, %v1641_v50 }
 0x364   : > { %v2901_v61 = vpop.eup %2900  ;;  %v1611_v5 = vmul.f32 %v1579_v25, %v4331_v12  ;;  %v1580_v39 = vmul.f32 %v2899_v53, %v4017_v16  ;;  %2422 = vmatmul.mubr.msk.bf16.gmra.mrb[36].mxu0 %vm4125_vm3, %v2421_v41  ;;  %v4335_v16 = vld [vmem:[#allocation29_spill] sm:$0xff]  ;;  %v1777_v25 = vld [vmem:[#allocation2 + $0x30] sm:$0xff] }
 0x365   : > { %v1642_v58 = vand.u32 2147483647, %v1610_v17  ;;  %v2424_v57 = vpack.c.bf16 %v1610_v17, %v1608_v4  ;;  %v1581_v38 = vmul.f32 %v2901_v61, %v4026_v30  ;;  %vm1717_vm5 = vcmp.le.f32.partialorder %v1685_v56, 1.0  ;;  %v1778_v56 = vld [vmem:[#allocation2 + $0x38] sm:$0xff] }
 0x366   : > { %v2903_v42 = vpop.eup %2902  ;;  %v1643_v32 = vand.u32 2147483647, %v1611_v5  ;;  %v1612_v3 = vmul.f32 %v1580_v39, %v4332_v36  ;;  %vm4143_vm6 = vmpackc.low %vm1717_vm5, %vm1715_vm4 }
 0x367   : > { %v1613_v60 = vmul.f32 %v1581_v38, %v4335_v16  ;;  %v1582_v63 = vmul.f32 %v2903_v42, %v4033_v33  ;;  %v1686_v51 = vmul.f32 %v3862_v22, %v1642_v58  ;;  %v1779_v58 = vld [vmem:[#allocation2 + $0x40] sm:$0xff] }
 0x368   : > { %v1644_v55 = vand.u32 2147483647, %v1612_v3  ;;  %v1687_v27 = vmul.f32 %v3856_v18, %v1643_v32  ;;  %v1780_v32 = vld [vmem:[#allocation2 + $0x48] sm:$0xff] }
 0x369   : > { %v1645_v30 = vand.u32 2147483647, %v1613_v60  ;;  %v2433_v62 = vpack.c.bf16 %v1613_v60, %v1611_v5  ;;  %v1614_v13 = vmul.f32 %v1582_v63, %v4336_v31  ;;  %vm1718_vm8 = vcmp.le.f32.partialorder %v1686_v51, 1.0  ;;  %v1781_v63 = vld [vmem:[#allocation2 + $0x50] sm:$0xff] }
 0x36a   : > { %vm2423_vm9 = vmpackc.low %vm1718_vm8, %vm1716_vm7  ;;  %v1688_v41 = vmul.f32 %v3862_v22, %v1644_v55  ;;  %vm1719_vm10 = vcmp.le.f32.partialorder %v1687_v27, 1.0 }
 0x36b   : > { %v1646_v20 = vand.u32 2147483647, %v1614_v13  ;;  %v2430_v0 = vpack.c.bf16 %v1614_v13, %v1612_v3  ;;  %2425 = vmatprep.mubr.msk.bf16.mxu0 %vm2423_vm9, %v2424_v57  ;;  %v1689_v49 = vmul.f32 %v3856_v18, %v1645_v30  ;;  %v1782_v30 = vld [vmem:[#allocation2 + $0x58] sm:$0xff] }
 0x36c   : > { %2428 = vmatmul.mubr.msk.bf16.gmra.mrb[40].mxu0 %vm4143_vm6, %v2427_v40  ;;  %vm1720_vm13 = vcmp.le.f32.partialorder %v1688_v41, 1.0  ;;  %v1783_v41 = vld [vmem:[#allocation2 + $0x60] sm:$0xff] }
 0x36d   : > { %v1690_v33 = vmul.f32 %v3862_v22, %v1646_v20  ;;  %vm1721_vm11 = vcmp.le.f32.partialorder %v1689_v49, 1.0 }
 0x36e   : > { %vm2432_vm12 = vmpackc.low %vm1721_vm11, %vm1719_vm10 }
 0x36f   : > { %vm1722_vm14 = vcmp.le.f32.partialorder %v1690_v33, 1.0 }
 0x370   : > { %vm2429_vm15 = vmpackc.low %vm1722_vm14, %vm1720_vm13 }
 0x371   : > { %2431 = vmatprep.mubr.msk.bf16.mxu0 %vm2429_vm15, %v2430_v0 }
 0x374   : > { %2434 = vmatmul.mubr.msk.bf16.gmra.mrb[44].mxu0 %vm2432_vm12, %v2433_v62 }
 0x40d   : > { %v2462_v59 = vpop.f32.mrb[16].mxu0 }
 0x40e   : > { %v2463_v15 = vpop.f32.mrb[17].mxu0 }
 0x40f   : > { %v2464_v21 = vadd.f32 %v2463_v15, %v2462_v59  ;;  %v2465_v2 = vpop.f32.mrb[18].mxu0 }
 0x410   : > { %v2466_v18 = vpop.f32.mrb[19].mxu0 }
 0x411   : > { %v2012_v29 = vadd.f32 %v2464_v21, %v1771_v19  ;;  %v2467_v52 = vadd.f32 %v2466_v18, %v2465_v2  ;;  %v1784_v19 = vld [vmem:[#allocation2 + $0x68] sm:$0xff] }
 0x413   : > { %2028 = vst [vmem:[#allocation2] sm:$0xff] %v2012_v29  ;;  %v2013_v28 = vadd.f32 %v2467_v52, %v1772_v44  ;;  %v1785_v29 = vld [vmem:[#allocation2 + $0x70] sm:$0xff] }
 0x415   : > { %2029 = vst [vmem:[#allocation2 + $0x8] sm:$0xff] %v2013_v28 }
 0x416   : > { %v2468_v22 = vpop.f32.mrb[20].mxu0 }
 0x417   : > { %v2469_v35 = vpop.f32.mrb[21].mxu0 }
 0x418   : > { %v2470_v54 = vadd.f32 %v2469_v35, %v2468_v22  ;;  %v2471_v47 = vpop.f32.mrb[22].mxu0 }
 0x419   : > { %v2472_v4 = vpop.f32.mrb[23].mxu0 }
 0x41a   : > { %v2014_v1 = vadd.f32 %v2470_v54, %v1773_v9  ;;  %v2473_v7 = vadd.f32 %v2472_v4, %v2471_v47  ;;  %v1786_v9 = vld [vmem:[#allocation2 + $0x78] sm:$0xff]  ;;  %v2048_v4 = vld [vmem:[#allocation2] sm:$0xff] (!%p2435_p1) }
 0x41b   : > { %2064 = vst [vmem:[%s3611_s17] sm:$0xff] (!%p2435_p1), %v2048_v4 }
 0x41c   : > { %2030 = vst [vmem:[#allocation2 + $0x10] sm:$0xff] %v2014_v1  ;;  %v2015_v26 = vadd.f32 %v2473_v7, %v1774_v24  ;;  %v2049_v1 = vld [vmem:[#allocation2 + $0x8] sm:$0xff] (!%p2435_p1) }
 0x41d   : > { %2065 = vst [vmem:[%s3611_s17 + $0x8] sm:$0xff] (!%p2435_p1), %v2049_v1 }
 0x41e   : > { %2031 = vst [vmem:[#allocation2 + $0x18] sm:$0xff] %v2015_v26 }
 0x41f   : > { %v2474_v43 = vpop.f32.mrb[24].mxu0 }
 0x420   : > { %v2475_v6 = vpop.f32.mrb[25].mxu0 }
 0x421   : > { %v2476_v10 = vadd.f32 %v2475_v6, %v2474_v43  ;;  %v2477_v46 = vpop.f32.mrb[26].mxu0 }
 0x422   : > { %v2478_v48 = vpop.f32.mrb[27].mxu0 }
 0x423   : > { %v2016_v37 = vadd.f32 %v2476_v10, %v1775_v45  ;;  %v2479_v50 = vadd.f32 %v2478_v48, %v2477_v46  ;;  %v2050_v7 = vld [vmem:[#allocation2 + $0x10] sm:$0xff] (!%p2435_p1) }
 0x424   : > { %2066 = vst [vmem:[%s3611_s17 + $0x10] sm:$0xff] (!%p2435_p1), %v2050_v7 }
 0x425   : > { %2032 = vst [vmem:[#allocation2 + $0x20] sm:$0xff] %v2016_v37  ;;  %v2017_v40 = vadd.f32 %v2479_v50, %v1776_v23  ;;  %v2051_v26 = vld [vmem:[#allocation2 + $0x18] sm:$0xff] (!%p2435_p1) }
 0x426   : > { %2067 = vst [vmem:[%s3611_s17 + $0x18] sm:$0xff] (!%p2435_p1), %v2051_v26 }
 0x427   : > { %2033 = vst [vmem:[#allocation2 + $0x28] sm:$0xff] %v2017_v40  ;;  %v2480_v11 = vpop.f32.mrb[28].mxu0 }
 0x428   : > { %v2481_v53 = vpop.f32.mrb[29].mxu0 }
 0x429   : > { %v2482_v14 = vadd.f32 %v2481_v53, %v2480_v11  ;;  %v2483_v17 = vpop.f32.mrb[30].mxu0 }
 0x42a   : > { %v2484_v61 = vpop.f32.mrb[31].mxu0 }
 0x42b   : > { %v2018_v12 = vadd.f32 %v2482_v14, %v1777_v25  ;;  %v2485_v5 = vadd.f32 %v2484_v61, %v2483_v17 }
 0x42c   : > { %v2052_v43 = vld [vmem:[#allocation2 + $0x20] sm:$0xff] (!%p2435_p1) }
 0x42d   : > { %2034 = vst [vmem:[#allocation2 + $0x30] sm:$0xff] %v2018_v12  ;;  %v2019_v39 = vadd.f32 %v2485_v5, %v1778_v56  ;;  %2068 = vst [vmem:[%s3611_s17 + $0x20] sm:$0xff] (!%p2435_p1), %v2052_v43 }
 0x42e   : > { %v2053_v45 = vld [vmem:[#allocation2 + $0x28] sm:$0xff] (!%p2435_p1) }
 0x42f   : > { %2035 = vst [vmem:[#allocation2 + $0x38] sm:$0xff] %v2019_v39  ;;  %v2486_v8 = vpop.f32.mrb[32].mxu0  ;;  %2069 = vst [vmem:[%s3611_s17 + $0x28] sm:$0xff] (!%p2435_p1), %v2053_v45 }
 0x430   : > { %v2487_v57 = vpop.f32.mrb[33].mxu0 }
 0x431   : > { %v2488_v38 = vadd.f32 %v2487_v57, %v2486_v8  ;;  %v2489_v42 = vpop.f32.mrb[34].mxu0 }
 0x432   : > { %v2490_v36 = vpop.f32.mrb[35].mxu0 }
 0x433   : > { %v2020_v3 = vadd.f32 %v2488_v38, %v1779_v58  ;;  %v2491_v34 = vadd.f32 %v2490_v36, %v2489_v42 }
 0x434   : > { %v2054_v6 = vld [vmem:[#allocation2 + $0x30] sm:$0xff] (!%p2435_p1) }
 0x435   : > { %2036 = vst [vmem:[#allocation2 + $0x40] sm:$0xff] %v2020_v3  ;;  %v2021_v16 = vadd.f32 %v2491_v34, %v1780_v32  ;;  %2070 = vst [vmem:[%s3611_s17 + $0x30] sm:$0xff] (!%p2435_p1), %v2054_v6 }
 0x436   : > { %v2055_v10 = vld [vmem:[#allocation2 + $0x38] sm:$0xff] (!%p2435_p1) }
 0x437   : > { %2037 = vst [vmem:[#allocation2 + $0x48] sm:$0xff] %v2021_v16  ;;  %v2492_v60 = vpop.f32.mrb[36].mxu0  ;;  %2071 = vst [vmem:[%s3611_s17 + $0x38] sm:$0xff] (!%p2435_p1), %v2055_v10 }
 0x438   : > { %v2493_v51 = vpop.f32.mrb[37].mxu0 }
 0x439   : > { %v2494_v55 = vadd.f32 %v2493_v51, %v2492_v60  ;;  %v2495_v27 = vpop.f32.mrb[38].mxu0 }
 0x43a   : > { %v2496_v62 = vpop.f32.mrb[39].mxu0 }
 0x43b   : > { %v2022_v31 = vadd.f32 %v2494_v55, %v1781_v63  ;;  %v2497_v13 = vadd.f32 %v2496_v62, %v2495_v27 }
 0x43c   : > { %v2056_v46 = vld [vmem:[#allocation2 + $0x40] sm:$0xff] (!%p2435_p1) }
 0x43d   : > { %2038 = vst [vmem:[#allocation2 + $0x50] sm:$0xff] %v2022_v31  ;;  %v2023_v20 = vadd.f32 %v2497_v13, %v1782_v30  ;;  %2072 = vst [vmem:[%s3611_s17 + $0x40] sm:$0xff] (!%p2435_p1), %v2056_v46 }
 0x43e   : > { %v2057_v23 = vld [vmem:[#allocation2 + $0x48] sm:$0xff] (!%p2435_p1) }
 0x43f   : > { %2039 = vst [vmem:[#allocation2 + $0x58] sm:$0xff] %v2023_v20  ;;  %v2498_v0 = vpop.f32.mrb[40].mxu0  ;;  %2073 = vst [vmem:[%s3611_s17 + $0x48] sm:$0xff] (!%p2435_p1), %v2057_v23 }
 0x440   : > { %v2499_v49 = vpop.f32.mrb[41].mxu0 }
 0x441   : > { %v2500_v33 = vadd.f32 %v2499_v49, %v2498_v0  ;;  %v2501_v59 = vpop.f32.mrb[42].mxu0 }
 0x442   : > { %v2502_v15 = vpop.f32.mrb[43].mxu0 }
 0x443   : > { %v2024_v21 = vadd.f32 %v2500_v33, %v1783_v41  ;;  %v2503_v2 = vadd.f32 %v2502_v15, %v2501_v59 }
 0x444   : > { %v2058_v48 = vld [vmem:[#allocation2 + $0x50] sm:$0xff] (!%p2435_p1) }
 0x445   : > { %2040 = vst [vmem:[#allocation2 + $0x60] sm:$0xff] %v2024_v21  ;;  %v2025_v44 = vadd.f32 %v2503_v2, %v1784_v19  ;;  %2074 = vst [vmem:[%s3611_s17 + $0x50] sm:$0xff] (!%p2435_p1), %v2058_v48 }
 0x446   : > { %v2059_v37 = vld [vmem:[#allocation2 + $0x58] sm:$0xff] (!%p2435_p1) }
 0x447   : > { %2041 = vst [vmem:[#allocation2 + $0x68] sm:$0xff] %v2025_v44  ;;  %v2504_v18 = vpop.f32.mrb[44].mxu0  ;;  %2075 = vst [vmem:[%s3611_s17 + $0x58] sm:$0xff] (!%p2435_p1), %v2059_v37 }
 0x448   : > { %v2505_v52 = vpop.f32.mrb[45].mxu0 }
 0x449   : > { %v2506_v28 = vadd.f32 %v2505_v52, %v2504_v18  ;;  %v2507_v22 = vpop.f32.mrb[46].mxu0  ;;  %2047 = sbr.rel (%p2435_p1) target bundleno = 1112 (0x458), region = 76 }
 0x44a   : > { %v2508_v35 = vpop.f32.mrb[47].mxu0 }
 0x44b   : > { %v2026_v54 = vadd.f32 %v2506_v28, %v1785_v29  ;;  %v2509_v47 = vadd.f32 %v2508_v35, %v2507_v22 }
 0x44c   : > { %v2060_v50 = vld [vmem:[#allocation2 + $0x60] sm:$0xff] (!%p2435_p1) }
 0x44d   : > { %2042 = vst [vmem:[#allocation2 + $0x70] sm:$0xff] %v2026_v54  ;;  %v2027_v24 = vadd.f32 %v2509_v47, %v1786_v9  ;;  %2076 = vst [vmem:[%s3611_s17 + $0x60] sm:$0xff] (!%p2435_p1), %v2060_v50 }
 0x44e   : > { %v2061_v40 = vld [vmem:[#allocation2 + $0x68] sm:$0xff] (!%p2435_p1) }
 0x44f   : > { %2043 = vst [vmem:[#allocation2 + $0x78] sm:$0xff] %v2027_v24  ;;  %2077 = vst [vmem:[%s3611_s17 + $0x68] sm:$0xff] (!%p2435_p1), %v2061_v40 }
 0x454   : > { %v2062_v11 = vld [vmem:[#allocation2 + $0x70] sm:$0xff] }
 0x455   : > { %2078 = vst [vmem:[%s3611_s17 + $0x70] sm:$0xff] %v2062_v11 }
 0x456   : > { %v2063_v25 = vld [vmem:[#allocation2 + $0x78] sm:$0xff] }
 0x457   : > { %2079 = vst [vmem:[%s3611_s17 + $0x78] sm:$0xff] %v2063_v25 }
 0x458 PF: > { %s4337_s30 = sld [smem:[#allocation19_spill]]  ;;  %s4338_s19 = sld [smem:[#allocation35_spill]] }
 0x459   : > { %s2094_s8 = sshll.u32 %s3611_s17, 4  ;;  %s2081_s13 = scalar_lea.sflag [#allocation7], %s3579_s16  ;;  %s4181_s8 = int_to_ptr.vmem [resolvable:$true] %s2094_s8 }
 0x45a   : > { %s3052_s7 = scalar_lea.vmem %s4181_s8, 2048  ;;  %p4339_p4 = scmp.ne.s32.totalorder %s4298_s15, 0 }
 0x45b   : > { %p3053_p6 = scmp.ne.s32.totalorder %s4181_s8, %s3052_s7  ;;  %s3197_s23 = smov [#allocation13]  }
 0x45c   : > { %s3056_s21 = sshll.u32 %s3197_s23, 4  ;;  %s3057_s21 = int_to_ptr.vmem [resolvable:$false] %s3056_s21 }
 0x45d   : > { %p3054_p9 = pnand %p3053_p6, %p4339_p4  ;;  %s3058_s4 = scalar_lea.vmem %s3057_s21, 4096 }
 0x45e   : > { %s2445_s22 = sshll.u32 %s4337_s30, 11  ;;  %p3059_p13 = scmp.lt.s32.totalorder %s4181_s8, %s3057_s21 }
 0x45f   : > { %s4178_s20 = scalar_lea.hbm %s4338_s19, %s2445_s22  ;;  %p3055_p12 = pneg %p3054_p9 }
 0x460   : > { %p3060_p2 = scmp.lt.s32.totalorder %s3058_s4, %s3052_s7 }
 0x462   : > { %p3061_p10 = por %p3060_p2, %p3059_p13 }
 0x464   : > { %p3062_p7 = pnand %p3061_p10, %p3055_p12 }
 0x466   : > { %3065 = shalt.err (!%p3062_p7)
}
 0x467   : > { %s3066_s14 = scalar_lea.hbm %s4178_s20, 2048  ;;  %s3070_s29 = scalar_lea.hbm %s4338_s19, 4096 }
 0x468   : > { %p3067_p3 = scmp.ne.s32.totalorder %s4178_s20, %s3066_s14  ;;  %p3071_p8 = scmp.lt.u32.totalorder %s4178_s20, %s4338_s19 }
 0x469   : > { %p3072_p11 = scmp.lt.u32.totalorder %s3070_s29, %s3066_s14  ;;  %p3074_p6 = scmp.lt.u32.totalorder %s3066_s14, %s4178_s20 }
 0x46a   : > { %p3068_p5 = pnand %p3067_p3, %p4339_p4 }
 0x46b   : > { %p3073_p1 = por %p3072_p11, %p3071_p8 }
 0x46c   : > { %p3069_p0 = pneg %p3068_p5 }
 0x46d   : > { %p3075_p9 = por %p3074_p6, %p3073_p1 }
 0x46f   : > { %p3076_p12 = pnand %p3075_p9, %p3069_p0 }
 0x471   : > { %3079 = shalt.err (!%p3076_p12)
}
 0x472   : > { %s3198_s10 = smov 128   ;;  %s3199_s30 = smov 8  }
 0x473   : > { %2554 = dma.vmem_to_hbm [thread:$0]  (%p4339_p4), %s4181_s8, 2048, %s4178_s20, %s2081_s13, %s3198_s10, %s3198_s10, %s3199_s30  }
 0x474 PF: > { %p2580_p13 = scmp.ge.s32.totalorder %s3182_s11, 2  ;;  %s2109_s22 = sand.u32 1, %s3154_s27  }
 0x475   : > { %p4340_p2 = scmp.ne.s32.totalorder %s4299_s24, 0  ;;  %s2110_s2 = scalar_lea.sflag [#allocation7], %s2109_s22 }
 0x477   : > { %p2574_p10 = pnand %p2580_p13, %p4340_p2 }
 0x479   : > { %3137 = dma.done.wait (!%p2574_p10), %s2110_s2, 2048  }
 0x47a   : > { %3139 = vsyncadd (!%p2574_p10), %s2110_s2, 4294965248  ;;  %s24_s11 = sadd.s32 1, %s3182_s11   ;;  %s4341_s15 = sld [smem:[#allocation18_spill]] }
 0x47b   : > { %p21_p7 = scmp.ge.s32.totalorder %s24_s11, 6   ;;  %s4342_s29 = sld [smem:[#allocation24_spill]] }
 0x47c   : > { %s4343_s30 = sld [smem:[#allocation20_spill]]  ;;  %s4344_s8 = sld [smem:[#allocation21_spill]] }
 0x47d   : > { %s4345_s9 = sld [smem:[#allocation22_spill]]  ;;  %s4346_s10 = sld [smem:[#allocation23_spill]] }
 0x47e   : > { %s4347_s24 = smov %s3146_s25  ;;  %s4348_s25 = smov %s3150_s26 }
 0x47f   : > { %s4349_s26 = smov %s3319_s18  ;;  %s4350_s27 = smov %s3158_s28 }
 0x480   : > { %s4351_s28 = smov %s4341_s15  ;;  %23 = sbr.rel (!%p21_p7) target bundleno = 16 (0x10), region = 141 }
 0x487   :  { %2115 = vsyncpa [#allocation6], 1 }
 0x488   :  { %2117 = vsyncpa [#allocation6 + $0x1], 1 }
 0x489   :  { %2118 = vsyncpa [#allocation9], 1 }
 0x48a   :  { %2119 = vsyncpa [#allocation7], 1 }
 0x48b   :  { %2121 = vsyncpa [#allocation7 + $0x1], 1 }

</bundles_post_ra>
